<compile_context>
chip_gen: v6e
topology: v6e:2x2x1
jax: 0.10.0
libtpu: 0.0.40
codegen_flags: <defaults>
</compile_context>

<pallas_src>
import numpy as np

import jax
import jax.numpy as jnp
from jax import lax
from jax.experimental import pallas as pl
from jax.experimental.pallas import tpu as pltpu

EPS = 1e-5  # nn.BatchNorm2d default eps
ROT = 8     # module-level `rot`


def _round_up(v, mult):
    return (v + mult - 1) // mult * mult


def _rot_offsets(ks, r):
    """Exact transcription of cal_rot_pad's offset math (scale=1)."""
    def rot_mat(theta):
        return np.array([[np.cos(theta), -np.sin(theta)],
                         [np.sin(theta), np.cos(theta)]])

    locx = np.array([[j - (ks - 1) / 2 for j in range(ks)] for _ in range(ks)])
    locy = np.array([[i - (ks - 1) / 2 for _ in range(ks)] for i in range(ks)])
    loc = np.concatenate((locx.reshape(-1, 1), locy.reshape(-1, 1)), axis=1)
    offs, m = [], 0
    for i in range(r):
        l = np.around(np.dot(loc, rot_mat(2 * np.pi / r * i)))
        offs.append(l.astype(np.int64))
        m = max(m, int(np.max(l)))
    return offs, m


def rotate_conv_noshare(x, w_conv, gamma, beta, *, r=ROT):
    """Forward of Rotate_Conv_noshare (training-mode BN).

    x:      (N, r*Cin_g, H, W)   float32
    w_conv: (Cout_g, Cin_g, ks, ks)  shared conv weight (conv bias unused by module)
    gamma, beta: (Cout_g,)       shared BN affine params
    returns (N, r*Cout_g, H, W)
    """
    N, Cin, H, W = x.shape
    Cout_g, Cin_g, ks, _ = w_conv.shape
    assert Cin == r * Cin_g

    offs, m = _rot_offsets(ks, r)
    Hp, Wp = H + 2 * m, W + 2 * m
    P_valid = N * Hp * Wp                       # flat (n, y', x') positions
    P = _round_up(P_valid, 128)                 # lane-dense output width
    halo = m * Wp + m                           # max |flat shift| of a rotated tap
    Lfull = _round_up(P + 2 * halo, 128)        # haloed flat input width
    nd = 2 * m + 1
    nD = nd * nd                                # distinct rounded offsets (<= 9 taps)
    K = nD * Cin_g

    # Static flat shifts, one per rounded offset (dy, dx) -- same for every rotation.
    dgrid = [(dy, dx) for dy in range(-m, m + 1) for dx in range(-m, m + 1)]
    starts = [halo - (dy * Wp + dx) for (dy, dx) in dgrid]

    # Per-rotation effective weights: taps whose rotated+rounded offsets coincide
    # are summed (conv is linear in the shifted input slabs).
    A = np.zeros((r, nD, ks * ks), np.float32)
    for i in range(r):
        for j in range(ks * ks):
            lx, ly = int(offs[i][j, 0]), int(offs[i][j, 1])
            A[i, (ly + m) * nd + (lx + m), j] += 1.0
    w_flat = w_conv.reshape(Cout_g, Cin_g, ks * ks).astype(jnp.float32)
    w_eff = jnp.einsum("rdj,oij->rodi", jnp.asarray(A), w_flat)      # (r,Cout_g,nD,Cin_g)
    w_eff = w_eff.reshape(r, Cout_g, K)

    # Input: split groups, (r, Cin_g, N, Hp, Wp) with spatial zero-pad, flatten the
    # (n, y', x') axis into the lane dim and add a flat zero halo for the shifts.
    xg = x.astype(jnp.float32).reshape(N, r, Cin_g, H, W).transpose(1, 2, 0, 3, 4)
    xp = jnp.pad(xg, ((0, 0), (0, 0), (0, 0), (m, m), (m, m)))
    xh = jnp.pad(xp.reshape(r, Cin_g, P_valid),
                 ((0, 0), (0, 0), (halo, Lfull - halo - P_valid)))   # (r, Cin_g, Lfull)

    # BN validity mask: 1 at in-crop positions (excludes pad margins / lane padding).
    mnp = np.zeros((N, Hp, Wp), np.float32)
    mnp[:, m:m + H, m:m + W] = 1.0
    mask = jnp.asarray(np.pad(mnp.reshape(1, P_valid), ((0, 0), (0, P - P_valid))))

    g = gamma.reshape(Cout_g, 1).astype(jnp.float32)
    b = beta.reshape(Cout_g, 1).astype(jnp.float32)
    inv_count = 1.0 / float(N * H * W)          # BN stats over (N, H, W) per group

    def kernel(x_ref, w_ref, mask_ref, gamma_ref, beta_ref, out_ref):
        xv = x_ref[...]                          # (Cin_g, Lfull) haloed flat activations
        wv = w_ref[...]                          # (Cout_g, K)    this rotation's weights

        # Rotated conv: 9 static shifts x Cin_g broadcast-MACs on full-width vregs.
        acc = jnp.zeros((Cout_g, P), jnp.float32)
        for d in range(nD):
            s = starts[d]
            slab = xv[:, s:s + P]                # (Cin_g, P) shifted window (static)
            for ci in range(Cin_g):
                col = wv[:, d * Cin_g + ci:d * Cin_g + ci + 1]      # (Cout_g, 1)
                acc = acc + col * slab[ci:ci + 1, :]                # -> (Cout_g, P)

        # BatchNorm2d (training batch stats, biased var), single-pass sum / sumsq,
        # masked so halo / crop margins do not contribute to the statistics.
        valid = mask_ref[...]                    # (1, P) 1.0 / 0.0
        av = acc * valid
        s1 = jnp.sum(av, axis=1, keepdims=True)          # (Cout_g, 1)
        s2 = jnp.sum(av * acc, axis=1, keepdims=True)    # sum of squares over valid
        mean = s1 * inv_count
        var = s2 * inv_count - mean * mean
        inv = lax.rsqrt(var + EPS)
        out_ref[...] = (acc - mean) * inv * gamma_ref[...] + beta_ref[...]

    out = pl.pallas_call(
        kernel,
        out_shape=jax.ShapeDtypeStruct((r, Cout_g, P), jnp.float32),
        grid=(r,),
        in_specs=[
            pl.BlockSpec((None, Cin_g, Lfull), lambda i: (i, 0, 0)),   # activations (group i)
            pl.BlockSpec((None, Cout_g, K), lambda i: (i, 0, 0)),      # effective weights i
            pl.BlockSpec((1, P), lambda i: (0, 0)),                    # BN validity mask
            pl.BlockSpec((Cout_g, 1), lambda i: (0, 0)),               # gamma
            pl.BlockSpec((Cout_g, 1), lambda i: (0, 0)),               # beta
        ],
        out_specs=pl.BlockSpec((None, Cout_g, P), lambda i: (i, 0, 0)),
        compiler_params=pltpu.CompilerParams(
            dimension_semantics=("parallel",),       # groups are independent -> megacore
            vmem_limit_bytes=32 * 1024 * 1024,       # tiny working set; safe on v7x 64MiB
        ),
    )(xh, w_eff, mask, g, b)

    # Host-side re-layout: drop lane padding, crop the spatial halo, back to NCHW
    # with the module's channel order (rotation-major).
    out = out[:, :, :P_valid].reshape(r, Cout_g, N, Hp, Wp)
    out = out[:, :, :, m:m + H, m:m + W]
    return jnp.transpose(out, (2, 0, 1, 3, 4)).reshape(N, r * Cout_g, H, W)


def _reference(x, w_conv, gamma, beta, *, r=ROT):
    """Pure-JAX literal emulation of the module's forward (training mode)."""
    N, Cin, H, W = x.shape
    Cout_g, Cin_g, ks, _ = w_conv.shape
    offs, m = _rot_offsets(ks, r)
    xg = x.astype(jnp.float32).reshape(N, r, Cin_g, H, W)
    gam = gamma.reshape(1, Cout_g, 1, 1)
    bet = beta.reshape(1, Cout_g, 1, 1)
    outs = []
    for i in range(r):
        xi = xg[:, i]
        xpad = jnp.pad(xi, ((0, 0), (0, 0), (m, m), (m, m)))
        acc = jnp.zeros((N, Cout_g, H, W), jnp.float32)
        for j in range(ks * ks):
            lx, ly = int(offs[i][j, 0]), int(offs[i][j, 1])
            kh, kw = j // ks, j % ks
            slab = xpad[:, :, m - ly:m - ly + H, m - lx:m - lx + W]
            acc = acc + jnp.einsum("oc,nchw->nohw", w_conv[:, :, kh, kw], slab)
        mean = acc.mean(axis=(0, 2, 3), keepdims=True)
        var = ((acc - mean) ** 2).mean(axis=(0, 2, 3), keepdims=True)
        outs.append((acc - mean) * lax.rsqrt(var + EPS) * gam + bet)
    return jnp.concatenate(outs, axis=1)


if __name__ == "__main__":
    # Small shapes consistent with the module: rot=8 -> in/out channels divisible by 8.
    N, H, W = 2, 16, 16
    ks = 3
    in_channel, out_channel = 16, 32            # per-group: Cin_g=2, Cout_g=4
    Cin_g, Cout_g = in_channel // ROT, out_channel // ROT

    key = jax.random.PRNGKey(0)
    kx, kw, kg, kb = jax.random.split(key, 4)
    x = jax.random.normal(kx, (N, in_channel, H, W), dtype=jnp.float32)
    fan_in = Cin_g * ks * ks
    w_conv = jax.random.normal(kw, (Cout_g, Cin_g, ks, ks), dtype=jnp.float32) \
        * (2.0 / fan_in) ** 0.5
    gamma = 1.0 + 0.1 * jax.random.normal(kg, (Cout_g,), dtype=jnp.float32)
    beta = 0.1 * jax.random.normal(kb, (Cout_g,), dtype=jnp.float32)

    out = rotate_conv_noshare(x, w_conv, gamma, beta)
    out = jax.block_until_ready(out)

    ref = _reference(x, w_conv, gamma, beta)
    assert out.shape == (N, out_channel, H, W)
    assert jnp.allclose(out, ref, atol=1e-3, rtol=1e-3), \
        f"max abs err {jnp.max(jnp.abs(out - ref))}"

    print("KERNEL_OK")
</pallas_src>

<mosaic_0001>
module attributes {stable_mosaic.version = 11 : i64} {
  func.func @kernel(%arg0: i32, %arg1: memref<1x2x896xf32, #tpu.memory_space<vmem>>, %arg2: memref<1x4x18xf32, #tpu.memory_space<vmem>>, %arg3: memref<1x768xf32, #tpu.memory_space<vmem>>, %arg4: memref<4x1xf32, #tpu.memory_space<vmem>>, %arg5: memref<4x1xf32, #tpu.memory_space<vmem>>, %arg6: memref<1x4x768xf32, #tpu.memory_space<vmem>>) attributes {dimension_semantics = [#tpu.dimension_semantics<parallel>], iteration_bounds = array<i64: 8>, scalar_prefetch = 0 : i64, scratch_operands = 0 : i64, tpu.core_type = #tpu.core_type<tc>, window_params = [{transform_indices = @transform_0, window_bounds = array<i64: 1, 2, 896>}, {transform_indices = @transform_1, window_bounds = array<i64: 1, 4, 18>}, {pipeline_mode = #tpu.pipeline_mode<synchronous>, transform_indices = @transform_2, window_bounds = array<i64: 1, 768>}, {pipeline_mode = #tpu.pipeline_mode<synchronous>, transform_indices = @transform_3, window_bounds = array<i64: 4, 1>}, {pipeline_mode = #tpu.pipeline_mode<synchronous>, transform_indices = @transform_4, window_bounds = array<i64: 4, 1>}, {transform_indices = @transform_5, window_bounds = array<i64: 1, 4, 768>}]} {
    %c0 = arith.constant 0 : index
    %c0_0 = arith.constant 0 : index
    %c0_1 = arith.constant 0 : index
    %0 = vector.load %arg1[%c0, %c0_0, %c0_1] : memref<1x2x896xf32, #tpu.memory_space<vmem>>, vector<1x2x896xf32>
    %1 = vector.shape_cast %0 : vector<1x2x896xf32> to vector<2x896xf32>
    %c0_2 = arith.constant 0 : index
    %c0_3 = arith.constant 0 : index
    %c0_4 = arith.constant 0 : index
    %2 = vector.load %arg2[%c0_2, %c0_3, %c0_4] : memref<1x4x18xf32, #tpu.memory_space<vmem>>, vector<1x4x18xf32>
    %3 = vector.shape_cast %2 : vector<1x4x18xf32> to vector<4x18xf32>
    %cst = arith.constant 0.000000e+00 : f32
    %4 = vector.broadcast %cst : f32 to vector<4x768xf32>
    %5 = vector.extract_strided_slice %1 {offsets = [0, 38], sizes = [2, 768], strides = [1, 1]} : vector<2x896xf32> to vector<2x768xf32>
    %6 = vector.extract_strided_slice %3 {offsets = [0, 0], sizes = [4, 1], strides = [1, 1]} : vector<4x18xf32> to vector<4x1xf32>
    %7 = vector.extract_strided_slice %5 {offsets = [0, 0], sizes = [1, 768], strides = [1, 1]} : vector<2x768xf32> to vector<1x768xf32>
    %8 = vector.broadcast %6 : vector<4x1xf32> to vector<4x768xf32>
    %9 = vector.broadcast %7 : vector<1x768xf32> to vector<4x768xf32>
    %10 = arith.mulf %8, %9 : vector<4x768xf32>
    %11 = arith.addf %4, %10 : vector<4x768xf32>
    %12 = vector.extract_strided_slice %3 {offsets = [0, 1], sizes = [4, 1], strides = [1, 1]} : vector<4x18xf32> to vector<4x1xf32>
    %13 = vector.extract_strided_slice %5 {offsets = [1, 0], sizes = [1, 768], strides = [1, 1]} : vector<2x768xf32> to vector<1x768xf32>
    %14 = vector.broadcast %12 : vector<4x1xf32> to vector<4x768xf32>
    %15 = vector.broadcast %13 : vector<1x768xf32> to vector<4x768xf32>
    %16 = arith.mulf %14, %15 : vector<4x768xf32>
    %17 = arith.addf %11, %16 : vector<4x768xf32>
    %18 = vector.extract_strided_slice %1 {offsets = [0, 37], sizes = [2, 768], strides = [1, 1]} : vector<2x896xf32> to vector<2x768xf32>
    %19 = vector.extract_strided_slice %3 {offsets = [0, 2], sizes = [4, 1], strides = [1, 1]} : vector<4x18xf32> to vector<4x1xf32>
    %20 = vector.extract_strided_slice %18 {offsets = [0, 0], sizes = [1, 768], strides = [1, 1]} : vector<2x768xf32> to vector<1x768xf32>
    %21 = vector.broadcast %19 : vector<4x1xf32> to vector<4x768xf32>
    %22 = vector.broadcast %20 : vector<1x768xf32> to vector<4x768xf32>
    %23 = arith.mulf %21, %22 : vector<4x768xf32>
    %24 = arith.addf %17, %23 : vector<4x768xf32>
    %25 = vector.extract_strided_slice %3 {offsets = [0, 3], sizes = [4, 1], strides = [1, 1]} : vector<4x18xf32> to vector<4x1xf32>
    %26 = vector.extract_strided_slice %18 {offsets = [1, 0], sizes = [1, 768], strides = [1, 1]} : vector<2x768xf32> to vector<1x768xf32>
    %27 = vector.broadcast %25 : vector<4x1xf32> to vector<4x768xf32>
    %28 = vector.broadcast %26 : vector<1x768xf32> to vector<4x768xf32>
    %29 = arith.mulf %27, %28 : vector<4x768xf32>
    %30 = arith.addf %24, %29 : vector<4x768xf32>
    %31 = vector.extract_strided_slice %1 {offsets = [0, 36], sizes = [2, 768], strides = [1, 1]} : vector<2x896xf32> to vector<2x768xf32>
    %32 = vector.extract_strided_slice %3 {offsets = [0, 4], sizes = [4, 1], strides = [1, 1]} : vector<4x18xf32> to vector<4x1xf32>
    %33 = vector.extract_strided_slice %31 {offsets = [0, 0], sizes = [1, 768], strides = [1, 1]} : vector<2x768xf32> to vector<1x768xf32>
    %34 = vector.broadcast %32 : vector<4x1xf32> to vector<4x768xf32>
    %35 = vector.broadcast %33 : vector<1x768xf32> to vector<4x768xf32>
    %36 = arith.mulf %34, %35 : vector<4x768xf32>
    %37 = arith.addf %30, %36 : vector<4x768xf32>
    %38 = vector.extract_strided_slice %3 {offsets = [0, 5], sizes = [4, 1], strides = [1, 1]} : vector<4x18xf32> to vector<4x1xf32>
    %39 = vector.extract_strided_slice %31 {offsets = [1, 0], sizes = [1, 768], strides = [1, 1]} : vector<2x768xf32> to vector<1x768xf32>
    %40 = vector.broadcast %38 : vector<4x1xf32> to vector<4x768xf32>
    %41 = vector.broadcast %39 : vector<1x768xf32> to vector<4x768xf32>
    %42 = arith.mulf %40, %41 : vector<4x768xf32>
    %43 = arith.addf %37, %42 : vector<4x768xf32>
    %44 = vector.extract_strided_slice %1 {offsets = [0, 20], sizes = [2, 768], strides = [1, 1]} : vector<2x896xf32> to vector<2x768xf32>
    %45 = vector.extract_strided_slice %3 {offsets = [0, 6], sizes = [4, 1], strides = [1, 1]} : vector<4x18xf32> to vector<4x1xf32>
    %46 = vector.extract_strided_slice %44 {offsets = [0, 0], sizes = [1, 768], strides = [1, 1]} : vector<2x768xf32> to vector<1x768xf32>
    %47 = vector.broadcast %45 : vector<4x1xf32> to vector<4x768xf32>
    %48 = vector.broadcast %46 : vector<1x768xf32> to vector<4x768xf32>
    %49 = arith.mulf %47, %48 : vector<4x768xf32>
    %50 = arith.addf %43, %49 : vector<4x768xf32>
    %51 = vector.extract_strided_slice %3 {offsets = [0, 7], sizes = [4, 1], strides = [1, 1]} : vector<4x18xf32> to vector<4x1xf32>
    %52 = vector.extract_strided_slice %44 {offsets = [1, 0], sizes = [1, 768], strides = [1, 1]} : vector<2x768xf32> to vector<1x768xf32>
    %53 = vector.broadcast %51 : vector<4x1xf32> to vector<4x768xf32>
    %54 = vector.broadcast %52 : vector<1x768xf32> to vector<4x768xf32>
    %55 = arith.mulf %53, %54 : vector<4x768xf32>
    %56 = arith.addf %50, %55 : vector<4x768xf32>
    %57 = vector.extract_strided_slice %1 {offsets = [0, 19], sizes = [2, 768], strides = [1, 1]} : vector<2x896xf32> to vector<2x768xf32>
    %58 = vector.extract_strided_slice %3 {offsets = [0, 8], sizes = [4, 1], strides = [1, 1]} : vector<4x18xf32> to vector<4x1xf32>
    %59 = vector.extract_strided_slice %57 {offsets = [0, 0], sizes = [1, 768], strides = [1, 1]} : vector<2x768xf32> to vector<1x768xf32>
    %60 = vector.broadcast %58 : vector<4x1xf32> to vector<4x768xf32>
    %61 = vector.broadcast %59 : vector<1x768xf32> to vector<4x768xf32>
    %62 = arith.mulf %60, %61 : vector<4x768xf32>
    %63 = arith.addf %56, %62 : vector<4x768xf32>
    %64 = vector.extract_strided_slice %3 {offsets = [0, 9], sizes = [4, 1], strides = [1, 1]} : vector<4x18xf32> to vector<4x1xf32>
    %65 = vector.extract_strided_slice %57 {offsets = [1, 0], sizes = [1, 768], strides = [1, 1]} : vector<2x768xf32> to vector<1x768xf32>
    %66 = vector.broadcast %64 : vector<4x1xf32> to vector<4x768xf32>
    %67 = vector.broadcast %65 : vector<1x768xf32> to vector<4x768xf32>
    %68 = arith.mulf %66, %67 : vector<4x768xf32>
    %69 = arith.addf %63, %68 : vector<4x768xf32>
    %70 = vector.extract_strided_slice %1 {offsets = [0, 18], sizes = [2, 768], strides = [1, 1]} : vector<2x896xf32> to vector<2x768xf32>
    %71 = vector.extract_strided_slice %3 {offsets = [0, 10], sizes = [4, 1], strides = [1, 1]} : vector<4x18xf32> to vector<4x1xf32>
    %72 = vector.extract_strided_slice %70 {offsets = [0, 0], sizes = [1, 768], strides = [1, 1]} : vector<2x768xf32> to vector<1x768xf32>
    %73 = vector.broadcast %71 : vector<4x1xf32> to vector<4x768xf32>
    %74 = vector.broadcast %72 : vector<1x768xf32> to vector<4x768xf32>
    %75 = arith.mulf %73, %74 : vector<4x768xf32>
    %76 = arith.addf %69, %75 : vector<4x768xf32>
    %77 = vector.extract_strided_slice %3 {offsets = [0, 11], sizes = [4, 1], strides = [1, 1]} : vector<4x18xf32> to vector<4x1xf32>
    %78 = vector.extract_strided_slice %70 {offsets = [1, 0], sizes = [1, 768], strides = [1, 1]} : vector<2x768xf32> to vector<1x768xf32>
    %79 = vector.broadcast %77 : vector<4x1xf32> to vector<4x768xf32>
    %80 = vector.broadcast %78 : vector<1x768xf32> to vector<4x768xf32>
    %81 = arith.mulf %79, %80 : vector<4x768xf32>
    %82 = arith.addf %76, %81 : vector<4x768xf32>
    %83 = vector.extract_strided_slice %1 {offsets = [0, 2], sizes = [2, 768], strides = [1, 1]} : vector<2x896xf32> to vector<2x768xf32>
    %84 = vector.extract_strided_slice %3 {offsets = [0, 12], sizes = [4, 1], strides = [1, 1]} : vector<4x18xf32> to vector<4x1xf32>
    %85 = vector.extract_strided_slice %83 {offsets = [0, 0], sizes = [1, 768], strides = [1, 1]} : vector<2x768xf32> to vector<1x768xf32>
    %86 = vector.broadcast %84 : vector<4x1xf32> to vector<4x768xf32>
    %87 = vector.broadcast %85 : vector<1x768xf32> to vector<4x768xf32>
    %88 = arith.mulf %86, %87 : vector<4x768xf32>
    %89 = arith.addf %82, %88 : vector<4x768xf32>
    %90 = vector.extract_strided_slice %3 {offsets = [0, 13], sizes = [4, 1], strides = [1, 1]} : vector<4x18xf32> to vector<4x1xf32>
    %91 = vector.extract_strided_slice %83 {offsets = [1, 0], sizes = [1, 768], strides = [1, 1]} : vector<2x768xf32> to vector<1x768xf32>
    %92 = vector.broadcast %90 : vector<4x1xf32> to vector<4x768xf32>
    %93 = vector.broadcast %91 : vector<1x768xf32> to vector<4x768xf32>
    %94 = arith.mulf %92, %93 : vector<4x768xf32>
    %95 = arith.addf %89, %94 : vector<4x768xf32>
    %96 = vector.extract_strided_slice %1 {offsets = [0, 1], sizes = [2, 768], strides = [1, 1]} : vector<2x896xf32> to vector<2x768xf32>
    %97 = vector.extract_strided_slice %3 {offsets = [0, 14], sizes = [4, 1], strides = [1, 1]} : vector<4x18xf32> to vector<4x1xf32>
    %98 = vector.extract_strided_slice %96 {offsets = [0, 0], sizes = [1, 768], strides = [1, 1]} : vector<2x768xf32> to vector<1x768xf32>
    %99 = vector.broadcast %97 : vector<4x1xf32> to vector<4x768xf32>
    %100 = vector.broadcast %98 : vector<1x768xf32> to vector<4x768xf32>
    %101 = arith.mulf %99, %100 : vector<4x768xf32>
    %102 = arith.addf %95, %101 : vector<4x768xf32>
    %103 = vector.extract_strided_slice %3 {offsets = [0, 15], sizes = [4, 1], strides = [1, 1]} : vector<4x18xf32> to vector<4x1xf32>
    %104 = vector.extract_strided_slice %96 {offsets = [1, 0], sizes = [1, 768], strides = [1, 1]} : vector<2x768xf32> to vector<1x768xf32>
    %105 = vector.broadcast %103 : vector<4x1xf32> to vector<4x768xf32>
    %106 = vector.broadcast %104 : vector<1x768xf32> to vector<4x768xf32>
    %107 = arith.mulf %105, %106 : vector<4x768xf32>
    %108 = arith.addf %102, %107 : vector<4x768xf32>
    %109 = vector.extract_strided_slice %1 {offsets = [0, 0], sizes = [2, 768], strides = [1, 1]} : vector<2x896xf32> to vector<2x768xf32>
    %110 = vector.extract_strided_slice %3 {offsets = [0, 16], sizes = [4, 1], strides = [1, 1]} : vector<4x18xf32> to vector<4x1xf32>
    %111 = vector.extract_strided_slice %109 {offsets = [0, 0], sizes = [1, 768], strides = [1, 1]} : vector<2x768xf32> to vector<1x768xf32>
    %112 = vector.broadcast %110 : vector<4x1xf32> to vector<4x768xf32>
    %113 = vector.broadcast %111 : vector<1x768xf32> to vector<4x768xf32>
    %114 = arith.mulf %112, %113 : vector<4x768xf32>
    %115 = arith.addf %108, %114 : vector<4x768xf32>
    %116 = vector.extract_strided_slice %3 {offsets = [0, 17], sizes = [4, 1], strides = [1, 1]} : vector<4x18xf32> to vector<4x1xf32>
    %117 = vector.extract_strided_slice %109 {offsets = [1, 0], sizes = [1, 768], strides = [1, 1]} : vector<2x768xf32> to vector<1x768xf32>
    %118 = vector.broadcast %116 : vector<4x1xf32> to vector<4x768xf32>
    %119 = vector.broadcast %117 : vector<1x768xf32> to vector<4x768xf32>
    %120 = arith.mulf %118, %119 : vector<4x768xf32>
    %121 = arith.addf %115, %120 : vector<4x768xf32>
    %c0_5 = arith.constant 0 : index
    %c0_6 = arith.constant 0 : index
    %122 = vector.load %arg3[%c0_5, %c0_6] : memref<1x768xf32, #tpu.memory_space<vmem>>, vector<1x768xf32>
    %123 = vector.broadcast %122 : vector<1x768xf32> to vector<4x768xf32>
    %124 = arith.mulf %121, %123 : vector<4x768xf32>
    %cst_7 = arith.constant dense<0.000000e+00> : vector<4xf32>
    %125 = vector.multi_reduction <add>, %124, %cst_7 [1] : vector<4x768xf32> to vector<4xf32>
    %126 = vector.shape_cast %125 : vector<4xf32> to vector<4x1xf32>
    %127 = arith.mulf %124, %121 : vector<4x768xf32>
    %cst_8 = arith.constant dense<0.000000e+00> : vector<4xf32>
    %128 = vector.multi_reduction <add>, %127, %cst_8 [1] : vector<4x768xf32> to vector<4xf32>
    %129 = vector.shape_cast %128 : vector<4xf32> to vector<4x1xf32>
    %cst_9 = arith.constant 0.001953125 : f32
    %130 = vector.broadcast %cst_9 : f32 to vector<4x1xf32>
    %131 = arith.mulf %126, %130 : vector<4x1xf32>
    %cst_10 = arith.constant 0.001953125 : f32
    %132 = vector.broadcast %cst_10 : f32 to vector<4x1xf32>
    %133 = arith.mulf %129, %132 : vector<4x1xf32>
    %134 = arith.mulf %131, %131 : vector<4x1xf32>
    %135 = arith.subf %133, %134 : vector<4x1xf32>
    %cst_11 = arith.constant 9.99999974E-6 : f32
    %136 = vector.broadcast %cst_11 : f32 to vector<4x1xf32>
    %137 = arith.addf %135, %136 : vector<4x1xf32>
    %138 = math.rsqrt %137 : vector<4x1xf32>
    %139 = vector.broadcast %131 : vector<4x1xf32> to vector<4x768xf32>
    %140 = arith.subf %121, %139 : vector<4x768xf32>
    %141 = vector.broadcast %138 : vector<4x1xf32> to vector<4x768xf32>
    %142 = arith.mulf %140, %141 : vector<4x768xf32>
    %c0_12 = arith.constant 0 : index
    %c0_13 = arith.constant 0 : index
    %143 = vector.load %arg4[%c0_12, %c0_13] : memref<4x1xf32, #tpu.memory_space<vmem>>, vector<4x1xf32>
    %144 = vector.broadcast %143 : vector<4x1xf32> to vector<4x768xf32>
    %145 = arith.mulf %142, %144 : vector<4x768xf32>
    %c0_14 = arith.constant 0 : index
    %c0_15 = arith.constant 0 : index
    %146 = vector.load %arg5[%c0_14, %c0_15] : memref<4x1xf32, #tpu.memory_space<vmem>>, vector<4x1xf32>
    %147 = vector.broadcast %146 : vector<4x1xf32> to vector<4x768xf32>
    %148 = arith.addf %145, %147 : vector<4x768xf32>
    %c0_16 = arith.constant 0 : index
    %c0_17 = arith.constant 0 : index
    %c0_18 = arith.constant 0 : index
    %149 = vector.load %arg6[%c0_16, %c0_17, %c0_18] : memref<1x4x768xf32, #tpu.memory_space<vmem>>, vector<1x4x768xf32>
    %150 = vector.shape_cast %149 : vector<1x4x768xf32> to vector<4x768xf32>
    %151 = vector.shape_cast %148 : vector<4x768xf32> to vector<1x4x768xf32>
    tpu.vector_store %arg6[%c0_16, %c0_17, %c0_18], %151 {strides = array<i32>} : memref<1x4x768xf32, #tpu.memory_space<vmem>>, vector<1x4x768xf32>,
    return
  }
  func.func @transform_0(%arg0: i32) -> (i32, i32, i32) {
    %c0_i32 = arith.constant 0 : i32
    %c0_i32_0 = arith.constant 0 : i32
    %c0_i32_1 = arith.constant 0 : i32
    return %arg0, %c0_i32, %c0_i32_0 : i32, i32, i32
  }
  func.func @transform_1(%arg0: i32) -> (i32, i32, i32) {
    %c0_i32 = arith.constant 0 : i32
    %c0_i32_0 = arith.constant 0 : i32
    %c0_i32_1 = arith.constant 0 : i32
    return %arg0, %c0_i32, %c0_i32_0 : i32, i32, i32
  }
  func.func @transform_2(%arg0: i32) -> (i32, i32) {
    %c0_i32 = arith.constant 0 : i32
    %c0_i32_0 = arith.constant 0 : i32
    %c0_i32_1 = arith.constant 0 : i32
    return %c0_i32, %c0_i32_0 : i32, i32
  }
  func.func @transform_3(%arg0: i32) -> (i32, i32) {
    %c0_i32 = arith.constant 0 : i32
    %c0_i32_0 = arith.constant 0 : i32
    %c0_i32_1 = arith.constant 0 : i32
    return %c0_i32, %c0_i32_0 : i32, i32
  }
  func.func @transform_4(%arg0: i32) -> (i32, i32) {
    %c0_i32 = arith.constant 0 : i32
    %c0_i32_0 = arith.constant 0 : i32
    %c0_i32_1 = arith.constant 0 : i32
    return %c0_i32, %c0_i32_0 : i32, i32
  }
  func.func @transform_5(%arg0: i32) -> (i32, i32, i32) {
    %c0_i32 = arith.constant 0 : i32
    %c0_i32_0 = arith.constant 0 : i32
    %c0_i32_1 = arith.constant 0 : i32
    return %arg0, %c0_i32, %c0_i32_0 : i32, i32, i32
  }
}

</mosaic_0001>

<bundles_post_ra>
// kernel: tpu_custom_call.1
= control target key start
LH: loop header
LB: loop body
LE: loop exit
PB: predicated region body
PF: predicated region fallthrough
CT: control target
= control target key end

     0   :  { %10 = vsyncpa [#allocation3], 0  ;;  %s2995_s0 = inlined_call_operand.hbm [shape: f32[8,2,896], index: 0, kind: input, shape index: {}]   ;;  %s2996_s1 = inlined_call_operand.hbm [shape: f32[8,4,18], index: 1, kind: input, shape index: {}]   ;;  %s2997_s2 = inlined_call_operand.vmem [shape: f32[1,768], index: 2, kind: input, shape index: {}]   ;;  %s2998_s3 = inlined_call_operand.vmem [shape: f32[4,1], index: 3, kind: input, shape index: {}]   ;;  %s2999_s4 = inlined_call_operand.vmem [shape: f32[4,1], index: 4, kind: input, shape index: {}]   ;;  %s3000_s5 = inlined_call_operand.hbm [shape: f32[8,4,768], index: 5, kind: output, shape index: {}]  }
   0x1   :  { %12 = vsyncpa [#allocation3 + $0x1], 0 }
   0x2   :  { %13 = vsyncpa [#allocation6], 0 }
   0x3   :  { %15 = vsyncpa [#allocation6 + $0x1], 0 }
   0x4   :  { %16 = vsyncpa [#allocation4], 0 }
   0x5   :  { %18 = vsyncpa [#allocation4 + $0x1], 0  ;;  %s1923_s18 = smov 0   ;;  %s1925_s19 = smov 0  }
   0x6   :  { %s1927_s20 = smov 0   ;;  %s1929_s21 = smov 0  }
   0x7 LB: > { %s1944_s22 = sadd.s32 4294967295, %s1861_s21   ;;  %s1622_s23 = sadd.s32 4294967294, %s1861_s21   ;;  %s1861_s21 = sphi %s1929_s21, %s3051_s21   ;;  %s1857_s20 = sphi %s1927_s20, %s3050_s20   ;;  %s1853_s19 = sphi %s1925_s19, %s3049_s19   ;;  %s1849_s18 = sphi %s1923_s18, %s3048_s18  }
   0x8   : > { %s1948_s24 = sadd.s32 1, %s1861_s21   ;;  %s31_s25 = sadd.s32 1, %s1857_s20 }
   0x9   : > { %s28_s26 = ssub.s32 %s1861_s21, %s1948_s24  ;;  %p38_p0 = scmp.ne.s32.totalorder %s1857_s20, %s1853_s19 }
   0xa   : > { %p29_p1 = scmp.eq.s32.totalorder %s28_s26, 0  ;;  %p39_p2 = scmp.eq.s32.totalorder %s1861_s21, 0 }
   0xb   : > { %p44_p3 = scmp.ne.s32.totalorder %s1853_s19, %s1849_s18  ;;  %p45_p4 = scmp.eq.s32.totalorder %s1944_s22, 0 }
   0xc   : > { %s1960_s27 = scalar_select %p29_p1, %s1857_s20, %s31_s25  }
   0xd   : > { %p40_p5 = por %p39_p2, %p38_p0  ;;  %p1962_p6 = por %p45_p4, %p44_p3 }
   0xe   : > { %p157_p7 = scmp.eq.s32.totalorder %s1944_s22, 7  ;;  %p163_p8 = scmp.eq.s32.totalorder %s1622_s23, 7 }
   0xf   : > { %s3015_s28 = scalar_select %p1962_p6, 1, 0 }
  0x10   : > { %p1655_p9 = scmp.lt.s32.totalorder %s1861_s21, 8  ;;  %p1968_p10 = por %p157_p7, %p38_p0 }
  0x11   : > { %p1972_p11 = por %p163_p8, %p44_p3  ;;  %s1977_s6 = sand.u32 1, %s1857_s20  }
  0x12   : > { %s3016_s29 = scalar_select %p1968_p10, 1, 0 }
  0x13   : > { %s3017_s30 = scalar_select %p1972_p11, 1, 0 }
  0x14   : > { %s1634_s7 = smul.u32 224, %s1861_s21  ;;  %p1986_p12 = pnand %p1655_p9, %p40_p5 }
  0x15   : > { %s1633_s8 = smul.u32 14, %s1977_s6  ;;  %s193_s15 = scalar_lea.sflag [#allocation3], %s1977_s6 }
  0x16   : > { %s1984_s11 = scalar_lea.hbm %s2995_s0, %s1634_s7  ;;  %p1739_p2 = pneg %p1986_p12 }
  0x17   : > { %s196_s13 = scalar_lea.vmem [#allocation2], %s1633_s8  ;;  %s1737_s16 = scalar_lea.hbm %s1984_s11, 224 }
  0x18   : > { %s204_s14 = sshll.u32 %s196_s13, 4  ;;  %p1738_p1 = scmp.ne.s32.totalorder %s1984_s11, %s1737_s16  ;;  %s205_s14 = int_to_ptr.vmem [resolvable:$true] %s204_s14 }
  0x19   : > { %s1742_s25 = scalar_lea.hbm %s2995_s0, 1792  ;;  %p1743_p5 = scmp.lt.s32.totalorder %s1984_s11, %s2995_s0 }
  0x1a   : > { %p1740_p3 = pnand %p1739_p2, %p1738_p1  ;;  %p1744_p7 = scmp.lt.s32.totalorder %s1742_s25, %s1737_s16 }
  0x1c   : > { %p1741_p4 = pneg %p1740_p3  ;;  %p1745_p8 = por %p1744_p7, %p1743_p5 }
  0x1e   : > { %p1746_p9 = pnand %p1745_p8, %p1741_p4 }
  0x20   : > { %1749 = shalt.err (!%p1746_p9)
}
  0x21   : > { %s1750_s8 = scalar_lea.vmem %s205_s14, 224  ;;  %s1863_s9 = smov [#allocation2]  }
  0x22   : > { %p1751_p13 = scmp.ne.s32.totalorder %s205_s14, %s1750_s8  ;;  %s1755_s10 = sshll.u32 %s1863_s9, 4  ;;  %s1756_s10 = int_to_ptr.vmem [resolvable:$false] %s1755_s10 }
  0x23   : > { %s1757_s13 = scalar_lea.vmem %s1756_s10, 448  ;;  %p1758_p3 = scmp.lt.s32.totalorder %s205_s14, %s1756_s10 }
  0x24   : > { %p1753_p0 = pnand %p1751_p13, %p1739_p2  ;;  %p1759_p11 = scmp.lt.s32.totalorder %s1757_s13, %s1750_s8 }
  0x26   : > { %p1754_p1 = pneg %p1753_p0  ;;  %p1760_p10 = por %p1759_p11, %p1758_p3 }
  0x28   : > { %p1761_p6 = pnand %p1760_p10, %p1754_p1 }
  0x2a   : > { %1764 = shalt.err (!%p1761_p6)
}
  0x2b   : > { %1647 = dma.hbm_to_vmem [thread:$0]  (!%p1986_p12), %s1984_s11, 224, %s205_s14, %s193_s15  }
  0x2c   : > { %p3019_p13 = scmp.lt.s32.totalorder %s1861_s21, 9  ;;  %p3020_p0 = scmp.ge.s32.totalorder %s1861_s21, 1 }
  0x2d   : > { %s1626_s17 = sshll.u32 %s1977_s6, 2  ;;  %s1627_s23 = sshll.u32 %s1861_s21, 6 }
  0x2e   : > { %p2017_p4 = pnand %p3020_p0, %p3019_p13  ;;  %s2026_s7 = scalar_lea.hbm %s2996_s1, %s1627_s23 }
  0x2f   : > { %s215_s8 = scalar_lea.vmem [#allocation5], %s1626_s17  ;;  %s212_s11 = scalar_lea.sflag [#allocation6], %s1977_s6 }
  0x30   : > { %s3021_s16 = scalar_select %p2017_p4, 1, 0 }
  0x31   : > { %s222_s9 = sshll.u32 %s215_s8, 4  ;;  %s1765_s14 = scalar_lea.hbm %s2026_s7, 64  ;;  %s223_s9 = int_to_ptr.vmem [resolvable:$true] %s222_s9 }
  0x32   : > { %p1766_p6 = scmp.ne.s32.totalorder %s2026_s7, %s1765_s14  ;;  %s1770_s13 = scalar_lea.hbm %s2996_s1, 512 }
  0x33   : > { %p1771_p5 = scmp.lt.s32.totalorder %s2026_s7, %s2996_s1  ;;  %p1772_p7 = scmp.lt.s32.totalorder %s1770_s13, %s1765_s14 }
  0x34   : > { %p1768_p10 = pnand %p1766_p6, %p1739_p2 }
  0x35   : > { %p1773_p8 = por %p1772_p7, %p1771_p5 }
  0x36   : > { %p1769_p11 = pneg %p1768_p10 }
  0x38   : > { %p1774_p9 = pnand %p1773_p8, %p1769_p11 }
  0x3a   : > { %1777 = shalt.err (!%p1774_p9)
}
  0x3b   : > { %s1778_s17 = scalar_lea.vmem %s223_s9, 64  ;;  %s1864_s6 = smov [#allocation5]  }
  0x3c   : > { %p1779_p1 = scmp.ne.s32.totalorder %s223_s9, %s1778_s17  ;;  %s1783_s26 = sshll.u32 %s1864_s6, 4  ;;  %s1784_s26 = int_to_ptr.vmem [resolvable:$false] %s1783_s26 }
  0x3d   : > { %s1785_s8 = scalar_lea.vmem %s1784_s26, 128  ;;  %p1786_p0 = scmp.lt.s32.totalorder %s223_s9, %s1784_s26 }
  0x3e   : > { %p1781_p3 = pnand %p1779_p1, %p1739_p2  ;;  %p1787_p6 = scmp.lt.s32.totalorder %s1785_s8, %s1778_s17 }
  0x40   : > { %p1782_p13 = pneg %p1781_p3  ;;  %p1788_p10 = por %p1787_p6, %p1786_p0 }
  0x42   : > { %p1789_p4 = pnand %p1788_p10, %p1782_p13 }
  0x44   : > { %1792 = shalt.err (!%p1789_p4)
}
  0x45   : > { %1650 = dma.hbm_to_vmem [thread:$0]  (!%p1986_p12), %s2026_s7, 64, %s223_s9, %s212_s11  }
  0x46   : > { %p3022_p11 = scmp.ne.s32.totalorder %s3021_s16, 0 }
  0x48   : > { %231 = sbr.rel (%p3022_p11) target bundleno = 1000 (0x3e8), region = 40 }
  0x4d   : > { %s2050_s14 = sand.u32 1, %s1853_s19   ;;  %p3023_p2 = scmp.ne.s32.totalorder %s3015_s28, 0 }
  0x4e   : > { %s1635_s15 = smul.u32 14, %s2050_s14  ;;  %s234_s10 = scalar_lea.sflag [#allocation3], %s2050_s14 }
  0x50   : > { %s2054_s13 = scalar_lea.vmem [#allocation2], %s1635_s15 }
  0x51   : > { %1836 = dma.done.wait (%p3023_p2), %s234_s10, 224  }
  0x52   : > { %1838 = vsyncadd (%p3023_p2), %s234_s10, 4294967072  ;;  %s1629_s12 = sshll.u32 %s2050_s14, 2  ;;  %s243_s16 = scalar_lea.sflag [#allocation6], %s2050_s14 }
  0x53   : > { %s246_s7 = scalar_lea.vmem [#allocation5], %s1629_s12 }
  0x54   : > { %1840 = dma.done.wait (%p3023_p2), %s243_s16, 64  }
  0x55   : > { %1842 = vsyncadd (%p3023_p2), %s243_s16, 4294967232  ;;  %v1865_v0 = vmov 2   ;;  %v1866_v1 = vmov 1   ;;  %v280_v2 = vld [vmem:[%s246_s7] sm:$0xf]  ;;  %v1867_v3 = vmov 4   ;;  %v288_v19 = vlaneseq }
  0x56   : > { %1717 = vset.pattern.permute.xlu1 %v1865_v0  ;;  %1716 = vset.pattern.permute.xlu0 %v1866_v1  ;;  %v1868_v4 = vmov 3   ;;  %v1869_v5 = vmov 7   ;;  %v1870_v6 = vmov 5   ;;  %v1871_v7 = vmov 10   ;;  %v278_v23 = vld [vmem:[%s2054_s13] sm:$0xff]  ;;  %s1883_s28 = smov 1  }
  0x57   : > { %447 = vperm.xlu1 %1717, %v280_v2   ;;  %366 = vperm.xlu0 %1716, %v280_v2   ;;  %v1872_v8 = vmov 6   ;;  %v1873_v9 = vmov 13   ;;  %v1874_v10 = vmov 8   ;;  %v1875_v11 = vmov 16   ;;  %v2076_v27 = vld [vmem:[%s2054_s13 + $0x8] sm:$0x3f] }
  0x58   : > { %v1876_v12 = vmov 9   ;;  %v1877_v13 = vmov 0   ;;  %v1878_v14 = vmov 11   ;;  %v1879_v15 = vmov 12   ;;  %s1884_s9 = smov 2   ;;  %s1885_s11 = smov 18  }
  0x59   : > { %v1880_v16 = vmov 14   ;;  %v1881_v17 = vmov 15   ;;  %v1882_v18 = vmov 17   ;;  %v289_v20 = vshrl.u32 %v288_v19, 7  ;;  %s1886_s25 = smov 19   ;;  %s1887_s23 = smov 20  }
  0x5a   : > { %s1888_s17 = smov 36   ;;  %s1889_s6 = smov 37   ;;  %vm478_vm0 = vcmask 7168   ;;  %vm583_vm1 = vcmask 15360   ;;  %vm688_vm2 = vcmask 146432   ;;  %vm793_vm3 = vcmask 154624  }
  0x5b   : > { %1719 = vset.pattern.permute.xlu0 %v1867_v3  ;;  %1718 = vset.pattern.permute.xlu1 %v1868_v4  ;;  %v2066_v21 = vsub.s32 0, %v289_v20  ;;  %v2068_v22 = vsub.s32 4, %v289_v20  ;;  %v2073_v26 = vsub.s32 2, %v289_v20  ;;  %v2078_v28 = vsub.s32 1, %v289_v20  ;;  %s1890_s26 = smov 38   ;;  %s1891_s10 = smov 90  }
  0x5c   : > { %552 = vperm.xlu0 %1719, %v280_v2   ;;  %500 = vperm.xlu1 %1718, %v280_v2   ;;  %v302_v29 = vsub.s32 6, %v289_v20  ;;  %v2094_v38 = vsub.s32 5, %v289_v20  ;;  %v2112_v45 = vsub.s32 3, %v289_v20  ;;  %v383_v53 = vsub.s32 7, %v289_v20  ;;  %p3046_p4 = scmp.ne.s32.totalorder %s3016_s29, 0 }
  0x5d   : > { %3024 = vst [vmem:[#allocation11_spill] sm:$0xff] %v2066_v21  ;;  %3025 = vst [vmem:[#allocation12_spill] sm:$0xff] %v2068_v22  ;;  %v299_v24 = vrot.slane %v278_v23, %v2068_v22  ;;  %v291_v25 = vrot.slane %v278_v23, %v2066_v21  ;;  %v307_v32 = vrot.slane %v2076_v27, %v2066_v21  ;;  %vm898_vm4 = vcmask 162816  }
  0x5e   : > { %3026 = vst [vmem:[#allocation13_spill] sm:$0xff] %v2073_v26  ;;  %3027 = vst [vmem:[#allocation14_spill] sm:$0xff] %v2078_v28  ;;  %v295_v33 = vrot.slane %v278_v23, %v2073_v26  ;;  %v372_v34 = vrot.slane %v278_v23, %v2078_v28  ;;  %v303_v37 = vrot.slane %v278_v23, %v302_v29  ;;  %vm1003_vm5 = vcmask 293888  }
  0x5f   : > { %v2081_v30 = vrot.slane %v299_v24, %v2066_v21  ;;  %v2084_v31 = vrot.slane %v291_v25, %v2066_v21  ;;  %3028 = vst [vmem:[#allocation15_spill] sm:$0xff] %v2094_v38  ;;  %v2101_v41 = vrot.slane %v307_v32, %v2066_v21  ;;  %v380_v44 = vrot.slane %v278_v23, %v2094_v38 }
  0x60   : > { %1722 = vset.pattern.permute.xlu0 %v1869_v5  ;;  %1720 = vset.pattern.permute.xlu1 %v1870_v6  ;;  %v2104_v42 = vrot.slane %v295_v33, %v2066_v21  ;;  %v2109_v43 = vrot.slane %v372_v34, %v2078_v28  ;;  %3031 = vst [vmem:[#allocation18_spill] sm:$0xff] %v2112_v45  ;;  %vm1108_vm6 = vcmask 302080   ;;  %vm1209_vm7 = vcmask 310272  }
  0x61   : > { %710 = vperm.xlu0 %1722, %v280_v2   ;;  %605 = vperm.xlu1 %1720, %v280_v2   ;;  %3029 = vst [vmem:[#allocation16_spill] sm:$0xff] %v2101_v41  ;;  %v2123_v50 = vrot.slane %v303_v37, %v2066_v21  ;;  %v311_v51 = vrot.slane %v2076_v27, %v2073_v26  ;;  %vm1354_vm8 = vcmask 736256   ;;  %vm1367_vm9 = vcmask 1043456  }
  0x62   : > { %3030 = vst [vmem:[#allocation17_spill] sm:$0xff] %v2109_v43  ;;  %v2134_v55 = vrot.slane %v380_v44, %v2078_v28  ;;  %v376_v57 = vrot.slane %v278_v23, %v2112_v45  ;;  %v384_v62 = vrot.slane %v278_v23, %v383_v53  ;;  %v388_v6 = vrot.slane %v2076_v27, %v2078_v28 }
  0x63   : > { %v2137_v56 = vrot.slane %v311_v51, %v2066_v21 }
  0x64   : > { %3032 = vst [vmem:[#allocation19_spill] sm:$0xff] %v2134_v55  ;;  %v2149_v61 = vrot.slane %v376_v57, %v2078_v28 }
  0x65   : > { %1725 = vset.pattern.permute.xlu0 %v1871_v7  ;;  %1721 = vset.pattern.permute.xlu1 %v1872_v8  ;;  %v315_v7 = vrot.slane %v2076_v27, %v2068_v22 }
  0x66   : > { %867 = vperm.xlu0 %1725, %v280_v2   ;;  %657 = vperm.xlu1 %1721, %v280_v2  }
  0x6a   : > { %1728 = vset.pattern.permute.xlu0 %v1873_v9  ;;  %1723 = vset.pattern.permute.xlu1 %v1874_v10  ;;  %v392_v9 = vrot.slane %v2076_v27, %v2112_v45 }
  0x6b   : > { %1025 = vperm.xlu0 %1728, %v280_v2   ;;  %762 = vperm.xlu1 %1723, %v280_v2  }
  0x6f   : > { %1731 = vset.pattern.permute.xlu0 %v1875_v11  ;;  %1724 = vset.pattern.permute.xlu1 %v1876_v12 }
  0x70   : > { %1182 = vperm.xlu0 %1731, %v280_v2   ;;  %815 = vperm.xlu1 %1724, %v280_v2  }
  0x74   : > { %1732 = vset.pattern.permute.xlu0 %v1877_v13  ;;  %1726 = vset.pattern.permute.xlu1 %v1878_v14  ;;  %v396_v14 = vrot.slane %v2076_v27, %v2094_v38 }
  0x75   : > { %283 = vperm.xlu0 %1732, %v280_v2   ;;  %920 = vperm.xlu1 %1726, %v280_v2  }
  0x76   : > { %v2204_v19 = vrot.slane %v396_v14, %v2078_v28 }
  0x79   : > { %1727 = vset.pattern.permute.xlu1 %v1879_v15  ;;  %v2192_v15 = vrot.slane %v315_v7, %v2066_v21 }
  0x7a   : > { %972 = vperm.xlu1 %1727, %v280_v2  }
  0x7e   : > { %1729 = vset.pattern.permute.xlu1 %v1880_v16 }
  0x7f   : > { %1077 = vperm.xlu1 %1729, %v280_v2  }
  0x83   : > { %1730 = vset.pattern.permute.xlu1 %v1881_v17 }
  0x84   : > { %1130 = vperm.xlu1 %1730, %v280_v2  }
  0x88   : > { %1733 = vset.pattern.permute.xlu1 %v1882_v18  ;;  %v2201_v18 = vrot.slane %v392_v9, %v2078_v28 }
  0x89   : > { %1230 = vperm.xlu1 %1733, %v280_v2   ;;  %v2160_v2 = vrot.slane %v384_v62, %v2078_v28 }
  0x8a   : > { %3034 = vst [vmem:[#allocation21_spill] sm:$0xff] %v2201_v18 }
  0x8b   : > { %3033 = vst [vmem:[#allocation20_spill] sm:$0xff] %v2160_v2 }
  0x8d   : > { %1734 = vset.pattern.permute.xlu1 %v1877_v13  ;;  %v2187_v13 = vrot.slane %v388_v6, %v2078_v28 }
  0xd2   : > { %v2090_v35 = vpop.permute.xlu1 %447  ;;  %v2092_v36 = vpop.permute.xlu0 %366 }
  0xd3   : > { %v452_v39 = vmul.f32 %v2090_v35, %v2081_v30  ;;  %v450_v40 = vmul.f32 %v2090_v35, %v2084_v31  ;;  %v454_v46 = vmul.f32 %v2090_v35, %v2101_v41  ;;  %v451_v47 = vmul.f32 %v2090_v35, %v2104_v42 }
  0xd4   : > { %v453_v54 = vmul.f32 %v2090_v35, %v2123_v50  ;;  %v455_v60 = vmul.f32 %v2090_v35, %v2137_v56  ;;  %v456_v23 = vmul.f32 %v2090_v35, %v2192_v15  ;;  %v432_v24 = vmul.f32 %v2109_v43, %v2092_v36 }
  0xd5   : > { %468 = vrot.lane.b32.xlu0 %v452_v39, %s1883_s28  ;;  %464 = vrot.lane.b32.xlu1 %v450_v40, %s1883_s28  ;;  %v433_v25 = vmul.f32 %v2149_v61, %v2092_v36  ;;  %v434_v27 = vmul.f32 %v2134_v55, %v2092_v36  ;;  %v435_v32 = vmul.f32 %v2160_v2, %v2092_v36 }
  0xd6   : > { %v436_v33 = vmul.f32 %v2187_v13, %v2092_v36  ;;  %v437_v39 = vmul.f32 %v2201_v18, %v2092_v36 }
  0xd7   : > { %v2118_v48 = vpop.permute.xlu1 %500  ;;  %v2120_v49 = vpop.permute.xlu0 %552 }
  0xd8   : > { %v503_v52 = vmul.f32 %v2118_v48, %v2109_v43  ;;  %v505_v59 = vmul.f32 %v2118_v48, %v2134_v55  ;;  %v555_v0 = vmul.f32 %v2120_v49, %v2084_v31  ;;  %v504_v1 = vmul.f32 %v2118_v48, %v2149_v61 }
  0xd9   : > { %472 = vrot.lane.b32.xlu0 %v454_v46, %s1883_s28  ;;  %466 = vrot.lane.b32.xlu1 %v451_v47, %s1883_s28  ;;  %v557_v4 = vmul.f32 %v2120_v49, %v2081_v30  ;;  %v506_v5 = vmul.f32 %v2118_v48, %v2160_v2  ;;  %v558_v11 = vmul.f32 %v2120_v49, %v2123_v50 }
  0xda   : > { %v556_v12 = vmul.f32 %v2120_v49, %v2104_v42  ;;  %v507_v17 = vmul.f32 %v2118_v48, %v2187_v13  ;;  %v560_v9 = vmul.f32 %v2120_v49, %v2137_v56  ;;  %v509_v14 = vmul.f32 %v2118_v48, %v2204_v19 }
  0xdc   : > { %v2140_v58 = vpop.permute.xlu0 %710  ;;  %v2176_v8 = vpop.permute.xlu1 %605 }
  0xdd   : > { %517 = vrot.lane.b32.xlu0 %v503_v52, %s1883_s28  ;;  %470 = vrot.lane.b32.xlu1 %v453_v54, %s1883_s28  ;;  %v609_v16 = vmul.f32 %v2176_v8, %v2149_v61  ;;  %v608_v40 = vmul.f32 %v2176_v8, %v2109_v43  ;;  %v438_v54 = vmul.f32 %v2204_v19, %v2092_v36 }
  0xde   : > { %v611_v7 = vmul.f32 %v2176_v8, %v2160_v2 }
  0xe1   : > { %521 = vrot.lane.b32.xlu0 %v505_v59, %s1883_s28  ;;  %474 = vrot.lane.b32.xlu1 %v455_v60, %s1883_s28  ;;  %v2153_v63 = vpop.permute.xlu0 %867  ;;  %v658_v62 = vpop.permute.xlu1 %657 }
  0xe2   : > { %v660_v36 = vmul.f32 %v658_v62, %v2084_v31  ;;  %v662_v6 = vmul.f32 %v658_v62, %v2081_v30 }
  0xe5   : > { %569 = vrot.lane.b32.xlu0 %v555_v0, %s1884_s9  ;;  %519 = vrot.lane.b32.xlu1 %v504_v1, %s1883_s28  ;;  %v559_v0 = vmul.f32 %v2120_v49, %v2101_v41  ;;  %v610_v1 = vmul.f32 %v2176_v8, %v2134_v55 }
  0xe6   : > { %v2164_v3 = vpop.permute.xlu0 %1025 }
  0xe9   : > { %573 = vrot.lane.b32.xlu0 %v557_v4, %s1884_s9  ;;  %523 = vrot.lane.b32.xlu1 %v506_v5, %s1883_s28  ;;  %v508_v5 = vmul.f32 %v2118_v48, %v2201_v18  ;;  %v713_v48 = vmul.f32 %v2140_v58, %v2109_v43 }
  0xeb   : > { %v2180_v10 = vpop.permute.xlu0 %1182 }
  0xed   : > { %575 = vrot.lane.b32.xlu0 %v558_v11, %s1884_s9  ;;  %571 = vrot.lane.b32.xlu1 %v556_v12, %s1884_s9  ;;  %v661_v11 = vmul.f32 %v658_v62, %v2104_v42  ;;  %v663_v12 = vmul.f32 %v658_v62, %v2123_v50 }
  0xf0   : > { %v284_v20 = vpop.permute.xlu0 %283 }
  0xf1   : > { %624 = vrot.lane.b32.xlu0 %v609_v16, %s1884_s9  ;;  %525 = vrot.lane.b32.xlu1 %v507_v17, %s1883_s28  ;;  %v351_v29 = vmul.f32 %v2084_v31, %v284_v20  ;;  %v352_v34 = vmul.f32 %v2104_v42, %v284_v20  ;;  %v353_v35 = vmul.f32 %v2081_v30, %v284_v20 }
  0xf2   : > { %v354_v37 = vmul.f32 %v2123_v50, %v284_v20  ;;  %v355_v46 = vmul.f32 %v2101_v41, %v284_v20  ;;  %v356_v47 = vmul.f32 %v2137_v56, %v284_v20  ;;  %v357_v60 = vmul.f32 %v2192_v15, %v284_v20 }
  0xf3   : > { %v2228_v44 = vadd.f32 %v432_v24, %v351_v29  ;;  %v2232_v51 = vadd.f32 %v433_v25, %v352_v34  ;;  %v2234_v52 = vadd.f32 %v434_v27, %v353_v35  ;;  %v714_v16 = vmul.f32 %v2140_v58, %v2149_v61 }
  0xf4   : > { %v2236_v53 = vadd.f32 %v435_v32, %v354_v37  ;;  %v2242_v57 = vadd.f32 %v436_v33, %v355_v46  ;;  %v2244_v59 = vadd.f32 %v437_v39, %v356_v47  ;;  %v2251_v4 = vadd.f32 %v438_v54, %v357_v60 }
  0xf5   : > { %476 = vrot.lane.b32.xlu0 %v456_v23, %s1883_s28  ;;  %622 = vrot.lane.b32.xlu1 %v608_v40, %s1884_s9  ;;  %v612_v17 = vmul.f32 %v2176_v8, %v2187_v13  ;;  %v561_v20 = vmul.f32 %v2120_v49, %v2192_v15  ;;  %v2287_v23 = vpop.permute.xlu1 %762  ;;  %v664_v24 = vmul.f32 %v658_v62, %v2101_v41 }
  0xf6   : > { %v715_v25 = vmul.f32 %v2140_v58, %v2134_v55  ;;  %v765_v49 = vmul.f32 %v2287_v23, %v2084_v31  ;;  %v613_v27 = vmul.f32 %v2176_v8, %v2201_v18  ;;  %v767_v29 = vmul.f32 %v2287_v23, %v2081_v30 }
  0xf7   : > { %v716_v32 = vmul.f32 %v2140_v58, %v2160_v2  ;;  %v665_v33 = vmul.f32 %v658_v62, %v2137_v56  ;;  %v766_v34 = vmul.f32 %v2287_v23, %v2104_v42  ;;  %v768_v37 = vmul.f32 %v2287_v23, %v2123_v50 }
  0xf8   : > { %v614_v39 = vmul.f32 %v2176_v8, %v2204_v19  ;;  %v717_v46 = vmul.f32 %v2140_v58, %v2187_v13  ;;  %v666_v54 = vmul.f32 %v658_v62, %v2192_v15  ;;  %v769_v60 = vmul.f32 %v2287_v23, %v2101_v41 }
  0xf9   : > { %577 = vrot.lane.b32.xlu0 %v559_v0, %s1884_s9  ;;  %626 = vrot.lane.b32.xlu1 %v610_v1, %s1884_s9  ;;  %v2311_v35 = vpop.permute.xlu1 %815  ;;  %v870_v62 = vmul.f32 %v2153_v63, %v2084_v31 }
  0xfa   : > { %v819_v40 = vmul.f32 %v2311_v35, %v2149_v61  ;;  %v818_v8 = vmul.f32 %v2311_v35, %v2109_v43  ;;  %v820_v0 = vmul.f32 %v2311_v35, %v2134_v55 }
  0xfd   : > { %674 = vrot.lane.b32.xlu0 %v660_v36, %s1885_s11  ;;  %527 = vrot.lane.b32.xlu1 %v508_v5, %s1883_s28  ;;  %v2325_v47 = vpop.permute.xlu1 %920  ;;  %v718_v36 = vmul.f32 %v2140_v58, %v2201_v18 }
 0x101   : > { %678 = vrot.lane.b32.xlu0 %v662_v6, %s1885_s11  ;;  %628 = vrot.lane.b32.xlu1 %v611_v7, %s1884_s9  ;;  %v2336_v1 = vpop.permute.xlu1 %972  ;;  %v872_v6 = vmul.f32 %v2153_v63, %v2081_v30  ;;  %v821_v7 = vmul.f32 %v2311_v35, %v2160_v2 }
 0x105   : > { %579 = vrot.lane.b32.xlu0 %v560_v9, %s1884_s9  ;;  %676 = vrot.lane.b32.xlu1 %v661_v11, %s1885_s11  ;;  %v2346_v5 = vpop.permute.xlu1 %1077  ;;  %v770_v9 = vmul.f32 %v2287_v23, %v2137_v56  ;;  %v871_v11 = vmul.f32 %v2153_v63, %v2104_v42 }
 0x106   : > { %v1084_v21 = vmul.f32 %v2346_v5, %v2101_v41 }
 0x109   : > { %680 = vrot.lane.b32.xlu0 %v663_v12, %s1885_s11  ;;  %529 = vrot.lane.b32.xlu1 %v509_v14, %s1883_s28  ;;  %v2358_v12 = vpop.permute.xlu1 %1130  ;;  %v873_v14 = vmul.f32 %v2153_v63, %v2123_v50  ;;  %s1636_s28 = smul.u32 24, %s2050_s14 }
 0x10d   : > { %729 = vrot.lane.b32.xlu0 %v714_v16, %s1885_s11  ;;  %630 = vrot.lane.b32.xlu1 %v612_v17, %s1884_s9  ;;  %v719_v16 = vmul.f32 %v2140_v58, %v2204_v19  ;;  %v2368_v17 = vpop.permute.xlu1 %1230  ;;  %v771_v58 = vmul.f32 %v2287_v23, %v2192_v15 }
 0x111   : > { %581 = vrot.lane.b32.xlu0 %v561_v20, %s1884_s9  ;;  %727 = vrot.lane.b32.xlu1 %v713_v48, %s1885_s11  ;;  %v924_v20 = vmul.f32 %v2325_v47, %v2149_v61  ;;  %v822_v48 = vmul.f32 %v2311_v35, %v2187_v13 }
 0x115   : > { %682 = vrot.lane.b32.xlu0 %v664_v24, %s1885_s11  ;;  %731 = vrot.lane.b32.xlu1 %v715_v25, %s1885_s11 }
 0x119   : > { %779 = vrot.lane.b32.xlu0 %v765_v49, %s1886_s25  ;;  %632 = vrot.lane.b32.xlu1 %v613_v27, %s1884_s9  ;;  %v923_v49 = vmul.f32 %v2325_v47, %v2109_v43 }
 0x11d   : > { %783 = vrot.lane.b32.xlu0 %v767_v29, %s1886_s25  ;;  %733 = vrot.lane.b32.xlu1 %v716_v32, %s1885_s11  ;;  %v874_v32 = vmul.f32 %v2153_v63, %v2101_v41 }
 0x121   : > { %684 = vrot.lane.b32.xlu0 %v665_v33, %s1885_s11  ;;  %781 = vrot.lane.b32.xlu1 %v766_v34, %s1886_s25  ;;  %v925_v33 = vmul.f32 %v2325_v47, %v2134_v55 }
 0x125   : > { %785 = vrot.lane.b32.xlu0 %v768_v37, %s1886_s25  ;;  %634 = vrot.lane.b32.xlu1 %v614_v39, %s1884_s9  ;;  %v975_v37 = vmul.f32 %v2336_v1, %v2084_v31  ;;  %v823_v39 = vmul.f32 %v2311_v35, %v2201_v18  ;;  %s277_s9 = scalar_lea.vmem [#allocation7], %s1636_s28 }
 0x129   : > { %834 = vrot.lane.b32.xlu0 %v819_v40, %s1886_s25  ;;  %735 = vrot.lane.b32.xlu1 %v717_v46, %s1885_s11 }
 0x12d   : > { %686 = vrot.lane.b32.xlu0 %v666_v54, %s1885_s11  ;;  %832 = vrot.lane.b32.xlu1 %v818_v8, %s1886_s25  ;;  %v977_v54 = vmul.f32 %v2336_v1, %v2081_v30  ;;  %v926_v8 = vmul.f32 %v2325_v47, %v2160_v2 }
 0x131   : > { %787 = vrot.lane.b32.xlu0 %v769_v60, %s1886_s25  ;;  %836 = vrot.lane.b32.xlu1 %v820_v0, %s1886_s25 }
 0x135   : > { %884 = vrot.lane.b32.xlu0 %v870_v62, %s1887_s23  ;;  %737 = vrot.lane.b32.xlu1 %v718_v36, %s1885_s11  ;;  %v875_v62 = vmul.f32 %v2153_v63, %v2137_v56  ;;  %v976_v36 = vmul.f32 %v2336_v1, %v2104_v42 }
 0x139   : > { %888 = vrot.lane.b32.xlu0 %v872_v6, %s1887_s23  ;;  %838 = vrot.lane.b32.xlu1 %v821_v7, %s1886_s25 }
 0x13d   : > { %789 = vrot.lane.b32.xlu0 %v770_v9, %s1886_s25  ;;  %886 = vrot.lane.b32.xlu1 %v871_v11, %s1887_s23  ;;  %v978_v9 = vmul.f32 %v2336_v1, %v2123_v50  ;;  %v824_v11 = vmul.f32 %v2311_v35, %v2204_v19 }
 0x141   : > { %890 = vrot.lane.b32.xlu0 %v873_v14, %s1887_s23  ;;  %739 = vrot.lane.b32.xlu1 %v719_v16, %s1885_s11  ;;  %s1637_s11 = smul.u32 384, %s1944_s22  ;;  %s1892_s22 = smov [#allocation7]  }
 0x142   : > { %s1797_s15 = sshll.u32 %s1892_s22, 4  ;;  %s1798_s15 = int_to_ptr.vmem [resolvable:$false] %s1797_s15 }
 0x145   : > { %939 = vrot.lane.b32.xlu0 %v924_v20, %s1887_s23  ;;  %840 = vrot.lane.b32.xlu1 %v822_v48, %s1886_s25  ;;  %v1029_v20 = vmul.f32 %v2164_v3, %v2149_v61  ;;  %v927_v48 = vmul.f32 %v2325_v47, %v2187_v13 }
 0x147   : > { %v2376_v24 = vpop.permute.xlu0 %468  ;;  %v2378_v25 = vpop.permute.xlu1 %464 }
 0x148   : > { %v492_v28 = vadd.f32 %v2378_v25, %v2228_v44 }
 0x149   : > { %791 = vrot.lane.b32.xlu0 %v771_v58, %s1886_s25  ;;  %937 = vrot.lane.b32.xlu1 %v923_v49, %s1887_s23  ;;  %v876_v49 = vmul.f32 %v2153_v63, %v2192_v15 }
 0x14b   : > { %v2386_v27 = vpop.permute.xlu0 %472  ;;  %v2388_v29 = vpop.permute.xlu1 %466 }
 0x14c   : > { %v479_v44 = vsel %vm478_vm0, %v2378_v25, %v2388_v29 }
 0x14d   : > { %892 = vrot.lane.b32.xlu0 %v874_v32, %s1887_s23  ;;  %941 = vrot.lane.b32.xlu1 %v925_v33, %s1887_s23  ;;  %v1028_v32 = vmul.f32 %v2164_v3, %v2109_v43 }
 0x14f   : > { %v2396_v23 = vpop.permute.xlu0 %517  ;;  %v2398_v34 = vpop.permute.xlu1 %470 }
 0x150   : > { %v481_v25 = vsel %vm478_vm0, %v2376_v24, %v2398_v34 }
 0x151   : > { %989 = vrot.lane.b32.xlu0 %v975_v37, %s1888_s17  ;;  %842 = vrot.lane.b32.xlu1 %v823_v39, %s1886_s25  ;;  %v979_v39 = vmul.f32 %v2336_v1, %v2101_v41 }
 0x153   : > { %v2406_v40 = vpop.permute.xlu0 %521  ;;  %v2408_v46 = vpop.permute.xlu1 %474 }
 0x155   : > { %993 = vrot.lane.b32.xlu0 %v977_v54, %s1888_s17  ;;  %943 = vrot.lane.b32.xlu1 %v926_v8, %s1887_s23  ;;  %v1030_v54 = vmul.f32 %v2164_v3, %v2134_v55 }
 0x157   : > { %v2416_v60 = vpop.permute.xlu0 %569  ;;  %v2418_v0 = vpop.permute.xlu1 %519 }
 0x158   : > { %v531_v41 = vsel %vm478_vm0, %v2396_v23, %v2418_v0 }
 0x159   : > { %894 = vrot.lane.b32.xlu0 %v875_v62, %s1887_s23  ;;  %991 = vrot.lane.b32.xlu1 %v976_v36, %s1888_s17  ;;  %v1080_v62 = vmul.f32 %v2346_v5, %v2084_v31  ;;  %v928_v36 = vmul.f32 %v2325_v47, %v2201_v18 }
 0x15b   : > { %v2426_v6 = vpop.permute.xlu0 %573  ;;  %v2428_v7 = vpop.permute.xlu1 %523 }
 0x15d   : > { %995 = vrot.lane.b32.xlu0 %v978_v9, %s1888_s17  ;;  %844 = vrot.lane.b32.xlu1 %v824_v11, %s1886_s25  ;;  %s1529_s25 = sshll.u32 %s277_s9, 4  ;;  %s1530_s25 = int_to_ptr.vmem [resolvable:$true] %s1529_s25 }
 0x15e   : > { %s1793_s8 = scalar_lea.vmem %s1530_s25, 384  ;;  %p1800_p8 = scmp.lt.s32.totalorder %s1530_s25, %s1798_s15 }
 0x15f   : > { %v2436_v14 = vpop.permute.xlu0 %575  ;;  %v2438_v16 = vpop.permute.xlu1 %571  ;;  %p1794_p12 = scmp.ne.s32.totalorder %s1530_s25, %s1793_s8 }
 0x161   : > { %1044 = vrot.lane.b32.xlu0 %v1029_v20, %s1888_s17  ;;  %945 = vrot.lane.b32.xlu1 %v927_v48, %s1887_s23  ;;  %v1082_v20 = vmul.f32 %v2346_v5, %v2081_v30  ;;  %v1031_v48 = vmul.f32 %v2164_v3, %v2160_v2  ;;  %p1795_p5 = pnand %p1794_p12, %p3046_p4 }
 0x163   : > { %v2446_v58 = vpop.permute.xlu0 %624  ;;  %v2448_v35 = vpop.permute.xlu1 %525  ;;  %p1796_p7 = pneg %p1795_p5 }
 0x165   : > { %896 = vrot.lane.b32.xlu0 %v876_v49, %s1887_s23  ;;  %1042 = vrot.lane.b32.xlu1 %v1028_v32, %s1888_s17 }
 0x167   : > { %v2456_v33 = vpop.permute.xlu0 %476  ;;  %v2458_v37 = vpop.permute.xlu1 %622 }
 0x169   : > { %997 = vrot.lane.b32.xlu0 %v979_v39, %s1888_s17  ;;  %1046 = vrot.lane.b32.xlu1 %v1030_v54, %s1888_s17  ;;  %v980_v39 = vmul.f32 %v2336_v1, %v2137_v56  ;;  %v1081_v54 = vmul.f32 %v2346_v5, %v2104_v42 }
 0x16b   : > { %v2466_v63 = vpop.permute.xlu0 %577  ;;  %v2468_v8 = vpop.permute.xlu1 %626 }
 0x16d   : > { %1094 = vrot.lane.b32.xlu0 %v1080_v62, %s1889_s6  ;;  %947 = vrot.lane.b32.xlu1 %v928_v36, %s1887_s23 }
 0x16f   : > { %v2476_v9 = vpop.permute.xlu0 %674  ;;  %v2478_v11 = vpop.permute.xlu1 %527 }
 0x171   : > { %1098 = vrot.lane.b32.xlu0 %v1082_v20, %s1889_s6  ;;  %1048 = vrot.lane.b32.xlu1 %v1031_v48, %s1888_s17  ;;  %v1083_v20 = vmul.f32 %v2346_v5, %v2123_v50  ;;  %v929_v48 = vmul.f32 %v2325_v47, %v2204_v19 }
 0x173   : > { %v2486_v49 = vpop.permute.xlu0 %678  ;;  %v2488_v32 = vpop.permute.xlu1 %628 }
 0x175   : > { %999 = vrot.lane.b32.xlu0 %v980_v39, %s1888_s17  ;;  %1096 = vrot.lane.b32.xlu1 %v1081_v54, %s1889_s6  ;;  %v1134_v39 = vmul.f32 %v2358_v12, %v2149_v61  ;;  %v1032_v54 = vmul.f32 %v2164_v3, %v2187_v13 }
 0x177   : > { %v2496_v62 = vpop.permute.xlu0 %579  ;;  %v2498_v36 = vpop.permute.xlu1 %676 }
 0x179   : > { %1100 = vrot.lane.b32.xlu0 %v1083_v20, %s1889_s6  ;;  %949 = vrot.lane.b32.xlu1 %v929_v48, %s1887_s23  ;;  %v981_v20 = vmul.f32 %v2336_v1, %v2192_v15  ;;  %v1133_v48 = vmul.f32 %v2358_v12, %v2109_v43  ;;  %v1135_v1 = vmul.f32 %v2358_v12, %v2134_v55 }
 0x17b   : > { %v2506_v38 = vpop.permute.xlu0 %680  ;;  %v2508_v22 = vpop.permute.xlu1 %529 }
 0x17d   : > { %1149 = vrot.lane.b32.xlu0 %v1134_v39, %s1889_s6  ;;  %1050 = vrot.lane.b32.xlu1 %v1032_v54, %s1888_s17  ;;  %v544_v39 = vadd.f32 %v2396_v23, %v492_v28  ;;  %v1185_v28 = vmul.f32 %v2180_v10, %v2084_v31  ;;  %v586_v23 = vsel %vm583_vm1, %v2426_v6, %v2436_v14 }
 0x17f   : > { %v2516_v45 = vpop.permute.xlu0 %729  ;;  %v2518_v47 = vpop.permute.xlu1 %630  ;;  %v597_v43 = vadd.f32 %v2416_v60, %v544_v39 }
 0x181   : > { %1001 = vrot.lane.b32.xlu0 %v981_v20, %s1888_s17  ;;  %1147 = vrot.lane.b32.xlu1 %v1133_v48, %s1889_s6  ;;  %v1033_v20 = vmul.f32 %v2164_v3, %v2201_v18  ;;  %v480_v48 = vsel %vm478_vm0, %v2388_v29, %v2376_v24  ;;  %v649_v39 = vadd.f32 %v2458_v37, %v597_v43 }
 0x182   : > { %v1187_v18 = vmul.f32 %v2180_v10, %v2081_v30  ;;  %v1136_v29 = vmul.f32 %v2358_v12, %v2160_v2  ;;  %v1186_v24 = vmul.f32 %v2180_v10, %v2104_v42  ;;  %v532_v43 = vsel %vm478_vm0, %v2418_v0, %v2406_v40 }
 0x183   : > { %v2529_v54 = vpop.permute.xlu0 %581  ;;  %v728_v26 = vpop.permute.xlu1 %727  ;;  %v702_v30 = vadd.f32 %v2476_v9, %v649_v39  ;;  %v495_v2 = vadd.f32 %v481_v25, %v2236_v53  ;;  %v689_v39 = vsel %vm688_vm2, %v2476_v9, %v2498_v36 }
 0x184   : > { %v741_v9 = vsel %vm688_vm2, %v728_v26, %v2516_v45 }
 0x185   : > { %1102 = vrot.lane.b32.xlu0 %v1084_v21, %s1889_s6  ;;  %1151 = vrot.lane.b32.xlu1 %v1135_v1, %s1889_s6  ;;  %v483_v21 = vsel %vm478_vm0, %v2386_v27, %v2408_v46  ;;  %v493_v1 = vadd.f32 %v479_v44, %v2232_v51  ;;  %v533_v51 = vsel %vm478_vm0, %v2406_v40, %v2428_v7 }
 0x186   : > { %v494_v44 = vadd.f32 %v480_v48, %v2234_v52  ;;  %v497_v42 = vadd.f32 %v483_v21, %v2244_v59  ;;  %v584_v40 = vsel %vm583_vm1, %v2416_v60, %v2438_v16  ;;  %v585_v52 = vsel %vm583_vm1, %v2438_v16, %v2426_v6 }
 0x187   : > { %v2556_v31 = vpop.permute.xlu0 %682  ;;  %v2558_v55 = vpop.permute.xlu1 %731  ;;  %v754_v53 = vadd.f32 %v728_v26, %v702_v30  ;;  %v545_v59 = vadd.f32 %v531_v41, %v493_v1  ;;  %v547_v48 = vadd.f32 %v533_v51, %v495_v2  ;;  %v637_v21 = vsel %vm583_vm1, %v2446_v58, %v2468_v8 }
 0x188   : > { %v546_v0 = vadd.f32 %v532_v43, %v494_v44  ;;  %v535_v60 = vsel %vm478_vm0, %v2448_v35, %v2478_v11  ;;  %v638_v41 = vsel %vm583_vm1, %v2468_v8, %v2488_v32  ;;  %v690_v8 = vsel %vm688_vm2, %v2498_v36, %v2486_v49 }
 0x189   : > { %1197 = vrot.lane.b32.xlu0 %v1185_v28, %s1890_s26  ;;  %1052 = vrot.lane.b32.xlu1 %v1033_v20, %s1888_s17  ;;  %v636_v28 = vsel %vm583_vm1, %v2458_v37, %v2446_v58  ;;  %v600_v6 = vadd.f32 %v586_v23, %v547_v48  ;;  %v598_v16 = vadd.f32 %v584_v40, %v545_v59 }
 0x18a   : > { %v599_v37 = vadd.f32 %v585_v52, %v546_v0  ;;  %v588_v58 = vsel %vm583_vm1, %v2466_v63, %v2496_v62  ;;  %v1085_v1 = vmul.f32 %v2346_v5, %v2137_v56  ;;  %v691_v23 = vsel %vm688_vm2, %v2486_v49, %v2506_v38 }
 0x18b   : > { %v780_v20 = vpop.permute.xlu0 %779  ;;  %v2593_v25 = vpop.permute.xlu1 %632  ;;  %v650_v43 = vadd.f32 %v636_v28, %v598_v16  ;;  %v652_v30 = vadd.f32 %v638_v41, %v600_v6  ;;  %v742_v36 = vsel %vm688_vm2, %v2516_v45, %v2558_v55  ;;  %v1188_v49 = vmul.f32 %v2180_v10, %v2123_v50 }
 0x18c   : > { %v2604_v2 = vadd.f32 %v780_v20, %v754_v53  ;;  %v651_v51 = vadd.f32 %v637_v21, %v599_v37  ;;  %v640_v40 = vsel %vm583_vm1, %v2518_v47, %v2593_v25  ;;  %v1034_v26 = vmul.f32 %v2164_v3, %v2204_v19 }
 0x18d   : > { %1201 = vrot.lane.b32.xlu0 %v1187_v18, %s1890_s26  ;;  %1153 = vrot.lane.b32.xlu1 %v1136_v29, %s1889_s6  ;;  %v549_v18 = vadd.f32 %v535_v60, %v497_v42  ;;  %v703_v52 = vadd.f32 %v689_v39, %v650_v43  ;;  %v705_v59 = vadd.f32 %v691_v23, %v652_v30 }
 0x18e   : > { %v704_v53 = vadd.f32 %v690_v8, %v651_v51  ;;  %v482_v37 = vsel %vm478_vm0, %v2398_v34, %v2386_v27  ;;  %v1234_v8 = vmul.f32 %v2368_v17, %v2149_v61  ;;  %v534_v43 = vsel %vm478_vm0, %v2428_v7, %v2448_v35 }
 0x18f   : > { %v784_v29 = vpop.permute.xlu0 %783  ;;  %v2619_v44 = vpop.permute.xlu1 %733  ;;  %v602_v42 = vadd.f32 %v588_v58, %v549_v18  ;;  %v755_v45 = vadd.f32 %v741_v9, %v703_v52  ;;  %v536_v27 = vsel %vm478_vm0, %v2478_v11, %v2508_v22  ;;  %v587_v61 = vsel %vm583_vm1, %v2436_v14, %v2466_v63 }
 0x190   : > { %v756_v0 = vadd.f32 %v742_v36, %v704_v53  ;;  %v743_v60 = vsel %vm688_vm2, %v2558_v55, %v2619_v44  ;;  %v484_v55 = vsel %vm478_vm0, %v2408_v46, %v2456_v33  ;;  %v496_v46 = vadd.f32 %v482_v37, %v2242_v57  ;;  %v3037_v36 = vld [vmem:[#allocation19_spill] sm:$0xff] }
 0x191   : > { %1104 = vrot.lane.b32.xlu0 %v1085_v1, %s1889_s6  ;;  %1199 = vrot.lane.b32.xlu1 %v1186_v24, %s1890_s26  ;;  %v654_v48 = vadd.f32 %v640_v40, %v602_v42  ;;  %v757_v58 = vadd.f32 %v743_v60, %v705_v59  ;;  %v1137_v1 = vmul.f32 %v2358_v12, %v2187_v13 }
 0x192   : > { %v498_v33 = vadd.f32 %v484_v55, %v2251_v4  ;;  %v589_v7 = vsel %vm583_vm1, %v2496_v62, %v2529_v54  ;;  %v548_v22 = vadd.f32 %v534_v43, %v496_v46  ;;  %v1086_v57 = vmul.f32 %v2346_v5, %v2192_v15  ;;  %v3035_v4 = vld [vmem:[#allocation17_spill] sm:$0xff] }
 0x193   : > { %v685_v28 = vpop.permute.xlu0 %684  ;;  %v782_v21 = vpop.permute.xlu1 %781  ;;  %v1233_v30 = vmul.f32 %v2368_v17, %v3035_v4  ;;  %v2690_v15 = vld [vmem:[%s2997_s2] sm:$0x3f]  ;;  %v692_v5 = vsel %vm688_vm2, %v2506_v38, %v2556_v31  ;;  %v1235_v40 = vmul.f32 %v2368_v17, %v3037_v36 }
 0x194   : > { %v693_v24 = vsel %vm688_vm2, %v2556_v31, %v685_v28  ;;  %v794_v41 = vsel %vm793_vm3, %v780_v20, %v782_v21  ;;  %v795_v50 = vsel %vm793_vm3, %v782_v21, %v784_v29  ;;  %v550_v35 = vadd.f32 %v536_v27, %v498_v33  ;;  %v3039_v21 = vld [vmem:[#allocation21_spill] sm:$0xff] }
 0x195   : > { %v2645_v6 = vadd.f32 %v693_v24, %v654_v48  ;;  %v808_v3 = vadd.f32 %v794_v41, %v755_v45  ;;  %v809_v16 = vadd.f32 %v795_v50, %v756_v0  ;;  %1203 = vrot.lane.b32.xlu0 %v1188_v49, %s1890_s26  ;;  %1054 = vrot.lane.b32.xlu1 %v1034_v26, %s1888_s17  ;;  %v3038_v49 = vld [vmem:[#allocation11_spill] sm:$0xff]  ;;  %v3040_v50 = vld [vmem:[#allocation13_spill] sm:$0xff] }
 0x196   : > { %v601_v63 = vadd.f32 %v587_v61, %v548_v22  ;;  %v603_v23 = vadd.f32 %v589_v7, %v550_v35  ;;  %v1281_v38 = vrot.slane %v2690_v15, %v3038_v49 }
 0x197   : > { %v786_v20 = vpop.permute.xlu0 %785  ;;  %v635_v39 = vpop.permute.xlu1 %634 }
 0x198   : > { %v796_v34 = vsel %vm793_vm3, %v784_v29, %v786_v20  ;;  %v639_v29 = vsel %vm583_vm1, %v2488_v32, %v2518_v47  ;;  %v641_v14 = vsel %vm583_vm1, %v2593_v25, %v635_v39  ;;  %v3036_v25 = vld [vmem:[#allocation16_spill] sm:$0xff] }
 0x199   : > { %v810_v51 = vadd.f32 %v796_v34, %v757_v58  ;;  %1247 = vrot.lane.b32.xlu0 %v1234_v8, %s1890_s26  ;;  %1155 = vrot.lane.b32.xlu1 %v1137_v1, %s1889_s6  ;;  %v653_v62 = vadd.f32 %v639_v29, %v601_v63  ;;  %v655_v32 = vadd.f32 %v641_v14, %v603_v23  ;;  %v3041_v39 = vld [vmem:[#allocation20_spill] sm:$0xff] }
 0x19a   : > { %v1189_v9 = vmul.f32 %v2180_v10, %v3036_v25  ;;  %v1236_v8 = vmul.f32 %v2368_v17, %v3041_v39 }
 0x19b   : > { %v835_v11 = vpop.permute.xlu0 %834  ;;  %v736_v18 = vpop.permute.xlu1 %735  ;;  %v706_v31 = vadd.f32 %v692_v5, %v653_v62 }
 0x19c   : > { %v744_v42 = vsel %vm688_vm2, %v2619_v44, %v736_v18  ;;  %v1138_v44 = vmul.f32 %v2358_v12, %v3039_v21 }
 0x19d   : > { %1106 = vrot.lane.b32.xlu0 %v1086_v57, %s1889_s6  ;;  %1245 = vrot.lane.b32.xlu1 %v1233_v30, %s1890_s26  ;;  %v758_v45 = vadd.f32 %v744_v42, %v706_v31 }
 0x19f   : > { %v687_v47 = vpop.permute.xlu0 %686  ;;  %v833_v54 = vpop.permute.xlu1 %832 }
 0x1a0   : > { %v694_v52 = vsel %vm688_vm2, %v685_v28, %v687_v47  ;;  %v846_v53 = vsel %vm793_vm3, %v833_v54, %v835_v11  ;;  %v859_v37 = vadd.f32 %v833_v54, %v2604_v2  ;;  %v1190_v2 = vmul.f32 %v2180_v10, %v2137_v56 }
 0x1a1   : > { %v708_v26 = vadd.f32 %v694_v52, %v655_v32  ;;  %v860_v59 = vadd.f32 %v846_v53, %v808_v3  ;;  %1205 = vrot.lane.b32.xlu0 %v1189_v9, %s1890_s26  ;;  %1249 = vrot.lane.b32.xlu1 %v1235_v40, %s1890_s26  ;;  %v1289_v3 = vrot.slane %v2690_v15, %v3040_v50 }
 0x1a2   : > { %v1238_v54 = vmul.f32 %v2368_v17, %v3039_v21 }
 0x1a3   : > { %v788_v0 = vpop.permute.xlu0 %787  ;;  %v837_v48 = vpop.permute.xlu1 %836 }
 0x1a4   : > { %v797_v28 = vsel %vm793_vm3, %v786_v20, %v788_v0  ;;  %v847_v60 = vsel %vm793_vm3, %v835_v11, %v837_v48  ;;  %v1139_v11 = vmul.f32 %v2358_v12, %v2204_v19  ;;  %v1237_v19 = vmul.f32 %v2368_v17, %v2187_v13  ;;  %v3045_v13 = vld [vmem:[#allocation15_spill] sm:$0xff] }
 0x1a5   : > { %v811_v24 = vadd.f32 %v797_v28, %v758_v45  ;;  %v861_v41 = vadd.f32 %v847_v60, %v809_v16  ;;  %1302 = vrot.lane.b32.xlu0 %v1281_v38, %s1890_s26  ;;  %1157 = vrot.lane.b32.xlu1 %v1138_v44, %s1889_s6  ;;  %v3042_v16 = vld [vmem:[#allocation14_spill] sm:$0xff]  ;;  %v1301_v36 = vrot.slane %v2690_v15, %v3045_v13 }
 0x1a6   : > { %v1285_v27 = vrot.slane %v2690_v15, %v3042_v16 }
 0x1a7   : > { %v885_v55 = vpop.permute.xlu0 %884  ;;  %v738_v58 = vpop.permute.xlu1 %737 }
 0x1a8   : > { %v912_v1 = vadd.f32 %v885_v55, %v859_v37  ;;  %v745_v20 = vsel %vm688_vm2, %v736_v18, %v738_v58 }
 0x1a9   : > { %v759_v43 = vadd.f32 %v745_v20, %v2645_v6  ;;  %1306 = vrot.lane.b32.xlu0 %v1289_v3, %s1890_s26  ;;  %1251 = vrot.lane.b32.xlu1 %v1236_v8, %s1890_s26  ;;  %v3043_v6 = vld [vmem:[#allocation18_spill] sm:$0xff] }
 0x1aa   : > { %v1293_v7 = vrot.slane %v2690_v15, %v3043_v6 }
 0x1ab   : > { %v889_v34 = vpop.permute.xlu0 %888  ;;  %v839_v46 = vpop.permute.xlu1 %838 }
 0x1ac   : > { %v848_v33 = vsel %vm793_vm3, %v837_v48, %v839_v46 }
 0x1ad   : > { %v862_v61 = vadd.f32 %v848_v33, %v810_v51  ;;  %1207 = vrot.lane.b32.xlu0 %v1190_v2, %s1890_s26  ;;  %1304 = vrot.lane.b32.xlu1 %v1285_v27, %s1890_s26  ;;  %v3044_v51 = vld [vmem:[#allocation12_spill] sm:$0xff] }
 0x1ae   : > { %v1297_v57 = vrot.slane %v2690_v15, %v3044_v51 }
 0x1af   : > { %v790_v22 = vpop.permute.xlu0 %789  ;;  %v887_v35 = vpop.permute.xlu1 %886 }
 0x1b0   : > { %v798_v18 = vsel %vm793_vm3, %v788_v0, %v790_v22  ;;  %v899_v56 = vsel %vm898_vm4, %v885_v55, %v887_v35  ;;  %v900_v10 = vsel %vm898_vm4, %v887_v35, %v889_v34 }
 0x1b1   : > { %v812_v4 = vadd.f32 %v798_v18, %v759_v43  ;;  %v913_v30 = vadd.f32 %v899_v56, %v860_v59  ;;  %v914_v29 = vadd.f32 %v900_v10, %v861_v41  ;;  %1308 = vrot.lane.b32.xlu0 %v1293_v7, %s1890_s26  ;;  %1159 = vrot.lane.b32.xlu1 %v1139_v11, %s1889_s6  ;;  %s2958_s6 = scalar_lea.hbm %s3000_s5, %s1637_s11 }
 0x1b3   : > { %v891_v14 = vpop.permute.xlu0 %890  ;;  %v740_v63 = vpop.permute.xlu1 %739 }
 0x1b4   : > { %v901_v12 = vsel %vm898_vm4, %v889_v34, %v891_v14  ;;  %v746_v23 = vsel %vm688_vm2, %v738_v58, %v740_v63 }
 0x1b5   : > { %v915_v5 = vadd.f32 %v901_v12, %v862_v61  ;;  %v760_v62 = vadd.f32 %v746_v23, %v708_v26  ;;  %1310 = vrot.lane.b32.xlu0 %v1297_v57, %s1890_s26  ;;  %1253 = vrot.lane.b32.xlu1 %v1237_v19, %s1890_s26 }
 0x1b7   : > { %v940_v32 = vpop.permute.xlu0 %939  ;;  %v841_v47 = vpop.permute.xlu1 %840 }
 0x1b8   : > { %v849_v25 = vsel %vm793_vm3, %v839_v46, %v841_v47 }
 0x1b9   : > { %v863_v9 = vadd.f32 %v849_v25, %v811_v24  ;;  %1255 = vrot.lane.b32.xlu1 %v1238_v54, %s1890_s26 }
 0x1bb   : > { %v792_v40 = vpop.permute.xlu0 %791  ;;  %v938_v42 = vpop.permute.xlu1 %937 }
 0x1bc   : > { %v799_v52 = vsel %vm793_vm3, %v790_v22, %v792_v40  ;;  %v951_v53 = vsel %vm898_vm4, %v938_v42, %v940_v32  ;;  %v964_v49 = vadd.f32 %v938_v42, %v912_v1 }
 0x1bd   : > { %v813_v38 = vadd.f32 %v799_v52, %v760_v62  ;;  %v965_v31 = vadd.f32 %v951_v53, %v913_v30  ;;  %1312 = vrot.lane.b32.xlu1 %v1301_v36, %s1890_s26  ;;  %s1515_s26 = scalar_lea.sflag [#allocation4], %s2050_s14 }
 0x1bf   : > { %v893_v17 = vpop.permute.xlu0 %892  ;;  %v942_v26 = vpop.permute.xlu1 %941 }
 0x1c0   : > { %v902_v59 = vsel %vm898_vm4, %v891_v14, %v893_v17  ;;  %v952_v45 = vsel %vm898_vm4, %v940_v32, %v942_v26 }
 0x1c1   : > { %v916_v0 = vadd.f32 %v902_v59, %v863_v9  ;;  %v966_v48 = vadd.f32 %v952_v45, %v914_v29 }
 0x1c3   : > { %v990_v15 = vpop.permute.xlu0 %989  ;;  %v843_v21 = vpop.permute.xlu1 %842 }
 0x1c4   : > { %v2757_v44 = vadd.f32 %v990_v15, %v964_v49  ;;  %v850_v28 = vsel %vm793_vm3, %v841_v47, %v843_v21 }
 0x1c5   : > { %v864_v60 = vadd.f32 %v850_v28, %v812_v4 }
 0x1c7   : > { %v994_v24 = vpop.permute.xlu0 %993  ;;  %v944_v41 = vpop.permute.xlu1 %943 }
 0x1c8   : > { %v953_v50 = vsel %vm898_vm4, %v942_v26, %v944_v41 }
 0x1c9   : > { %v967_v3 = vadd.f32 %v953_v50, %v915_v5 }
 0x1cb   : > { %v895_v37 = vpop.permute.xlu0 %894  ;;  %v992_v55 = vpop.permute.xlu1 %991 }
 0x1cc   : > { %v903_v58 = vsel %vm898_vm4, %v893_v17, %v895_v37  ;;  %v1004_v39 = vsel %vm1003_vm5, %v990_v15, %v992_v55  ;;  %v1005_v8 = vsel %vm1003_vm5, %v992_v55, %v994_v24 }
 0x1cd   : > { %v917_v1 = vadd.f32 %v903_v58, %v864_v60  ;;  %v1018_v20 = vadd.f32 %v1004_v39, %v965_v31  ;;  %v1019_v43 = vadd.f32 %v1005_v8, %v966_v48 }
 0x1cf   : > { %v996_v16 = vpop.permute.xlu0 %995  ;;  %v845_v27 = vpop.permute.xlu1 %844 }
 0x1d0   : > { %v1006_v34 = vsel %vm1003_vm5, %v994_v24, %v996_v16  ;;  %v851_v46 = vsel %vm793_vm3, %v843_v21, %v845_v27 }
 0x1d1   : > { %v2766_v2 = vadd.f32 %v1006_v34, %v967_v3  ;;  %v865_v33 = vadd.f32 %v851_v46, %v813_v38 }
 0x1d3   : > { %v1045_v61 = vpop.permute.xlu0 %1044  ;;  %v946_v6 = vpop.permute.xlu1 %945 }
 0x1d4   : > { %v954_v7 = vsel %vm898_vm4, %v944_v41, %v946_v6 }
 0x1d5   : > { %v968_v22 = vadd.f32 %v954_v7, %v916_v0 }
 0x1d7   : > { %v897_v35 = vpop.permute.xlu0 %896  ;;  %v1043_v11 = vpop.permute.xlu1 %1042 }
 0x1d8   : > { %v904_v18 = vsel %vm898_vm4, %v895_v37, %v897_v35  ;;  %v1056_v56 = vsel %vm1003_vm5, %v1043_v11, %v1045_v61  ;;  %v1069_v3 = vadd.f32 %v1043_v11, %v2757_v44 }
 0x1d9   : > { %v918_v10 = vadd.f32 %v904_v18, %v865_v33  ;;  %v1070_v51 = vadd.f32 %v1056_v56, %v1018_v20 }
 0x1db   : > { %v998_v57 = vpop.permute.xlu0 %997  ;;  %v1047_v4 = vpop.permute.xlu1 %1046 }
 0x1dc   : > { %v1007_v30 = vsel %vm1003_vm5, %v996_v16, %v998_v57  ;;  %v1057_v29 = vsel %vm1003_vm5, %v1045_v61, %v1047_v4 }
 0x1dd   : > { %v2773_v14 = vadd.f32 %v1007_v30, %v968_v22  ;;  %v1071_v63 = vadd.f32 %v1057_v29, %v1019_v43 }
 0x1df   : > { %v1095_v19 = vpop.permute.xlu0 %1094  ;;  %v948_v12 = vpop.permute.xlu1 %947 }
 0x1e0   : > { %v955_v23 = vsel %vm898_vm4, %v946_v6, %v948_v12  ;;  %v1122_v58 = vadd.f32 %v1095_v19, %v1069_v3 }
 0x1e1   : > { %v969_v5 = vadd.f32 %v955_v23, %v917_v1 }
 0x1e3   : > { %v1099_v62 = vpop.permute.xlu0 %1098  ;;  %v2776_v32 = vpop.permute.xlu1 %1048 }
 0x1e4   : > { %v1058_v44 = vsel %vm1003_vm5, %v1047_v4, %v2776_v32 }
 0x1e5   : > { %v1072_v56 = vadd.f32 %v1058_v44, %v2766_v2 }
 0x1e7   : > { %v1000_v47 = vpop.permute.xlu0 %999  ;;  %v1097_v54 = vpop.permute.xlu1 %1096 }
 0x1e8   : > { %v1008_v25 = vsel %vm1003_vm5, %v998_v57, %v1000_v47  ;;  %v1109_v43 = vsel %vm1108_vm6, %v1095_v19, %v1097_v54  ;;  %v1110_v16 = vsel %vm1108_vm6, %v1097_v54, %v1099_v62 }
 0x1e9   : > { %v2779_v9 = vadd.f32 %v1008_v25, %v969_v5  ;;  %v1123_v7 = vadd.f32 %v1109_v43, %v1070_v51  ;;  %v1124_v22 = vadd.f32 %v1110_v16, %v1071_v63 }
 0x1eb   : > { %v2781_v13 = vpop.permute.xlu0 %1100  ;;  %v950_v36 = vpop.permute.xlu1 %949 }
 0x1ec   : > { %v956_v40 = vsel %vm898_vm4, %v948_v12, %v950_v36  ;;  %v1111_v35 = vsel %vm1108_vm6, %v1099_v62, %v2781_v13 }
 0x1ed   : > { %v970_v42 = vadd.f32 %v956_v40, %v918_v10  ;;  %v1125_v19 = vadd.f32 %v1111_v35, %v1072_v56 }
 0x1ef   : > { %v1150_v52 = vpop.permute.xlu0 %1149  ;;  %v2784_v53 = vpop.permute.xlu1 %1050 }
 0x1f0   : > { %v1059_v5 = vsel %vm1003_vm5, %v2776_v32, %v2784_v53 }
 0x1f3   : > { %v1002_v49 = vpop.permute.xlu0 %1001  ;;  %v1148_v38 = vpop.permute.xlu1 %1147 }
 0x1f4   : > { %v1009_v31 = vsel %vm1003_vm5, %v1000_v47, %v1002_v49  ;;  %v1174_v39 = vadd.f32 %v1148_v38, %v1122_v58  ;;  %v1161_v33 = vsel %vm1108_vm6, %v1148_v38, %v1150_v52  ;;  %v1073_v49 = vadd.f32 %v1059_v5, %v2773_v14 }
 0x1f5   : > { %v2787_v17 = vadd.f32 %v1009_v31, %v970_v42  ;;  %v1175_v10 = vadd.f32 %v1161_v33, %v1123_v7 }
 0x1f7   : > { %v2789_v26 = vpop.permute.xlu0 %1102  ;;  %v1152_v59 = vpop.permute.xlu1 %1151 }
 0x1f8   : > { %v1162_v61 = vsel %vm1108_vm6, %v1150_v52, %v1152_v59  ;;  %v1112_v40 = vsel %vm1108_vm6, %v2781_v13, %v2789_v26 }
 0x1f9   : > { %v1176_v57 = vadd.f32 %v1162_v61, %v1124_v22 }
 0x1fb   : > { %v1198_v45 = vpop.permute.xlu0 %1197  ;;  %v2791_v0 = vpop.permute.xlu1 %1052 }
 0x1fc   : > { %v1222_v20 = vadd.f32 %v1198_v45, %v1174_v39  ;;  %v1060_v13 = vsel %vm1003_vm5, %v2784_v53, %v2791_v0 }
 0x1ff   : > { %v1202_v48 = vpop.permute.xlu0 %1201  ;;  %v1154_v15 = vpop.permute.xlu1 %1153 }
 0x200   : > { %v1163_v29 = vsel %vm1108_vm6, %v1152_v59, %v1154_v15 }
 0x201   : > { %v1177_v62 = vadd.f32 %v1163_v29, %v1125_v19 }
 0x203   : > { %v2793_v21 = vpop.permute.xlu0 %1104  ;;  %v1200_v28 = vpop.permute.xlu1 %1199 }
 0x204   : > { %v1210_v11 = vsel %vm1209_vm7, %v1198_v45, %v1200_v28  ;;  %v1211_v18 = vsel %vm1209_vm7, %v1200_v28, %v1202_v48 }
 0x205   : > { %v1223_v12 = vadd.f32 %v1210_v11, %v1175_v10  ;;  %v1224_v23 = vadd.f32 %v1211_v18, %v1176_v57 }
 0x207   : > { %v2795_v60 = vpop.permute.xlu0 %1203  ;;  %v2797_v24 = vpop.permute.xlu1 %1054 }
 0x208   : > { %v1212_v2 = vsel %vm1209_vm7, %v1202_v48, %v2795_v60  ;;  %v1126_v48 = vadd.f32 %v1112_v40, %v1073_v49 }
 0x209   : > { %v1225_v38 = vadd.f32 %v1212_v2, %v1177_v62 }
 0x20b   : > { %v1248_v41 = vpop.permute.xlu0 %1247  ;;  %v2799_v50 = vpop.permute.xlu1 %1155 }
 0x20c   : > { %v1164_v45 = vsel %vm1108_vm6, %v1154_v15, %v2799_v50  ;;  %v1113_v15 = vsel %vm1108_vm6, %v2789_v26, %v2793_v21 }
 0x20d   : > { %v1178_v58 = vadd.f32 %v1164_v45, %v1126_v48 }
 0x20f   : > { %v2802_v37 = vpop.permute.xlu0 %1106  ;;  %v1246_v55 = vpop.permute.xlu1 %1245 }
 0x210   : > { %v2808_v27 = vadd.f32 %v1246_v55, %v1222_v20  ;;  %v1257_v51 = vsel %vm1209_vm7, %v1246_v55, %v1248_v41  ;;  %v1061_v20 = vsel %vm1003_vm5, %v2791_v0, %v2797_v24  ;;  %v1114_v26 = vsel %vm1108_vm6, %v2793_v21, %v2802_v37 }
 0x211   : > { %v2831_v47 = vadd.f32 %v1257_v51, %v1223_v12  ;;  %v1075_v44 = vadd.f32 %v1061_v20, %v2787_v17 }
 0x213   : > { %v2804_v8 = vpop.permute.xlu0 %1205  ;;  %v1250_v1 = vpop.permute.xlu1 %1249  ;;  %v1128_v37 = vadd.f32 %v1114_v26, %v1075_v44 }
 0x214   : > { %v1258_v63 = vsel %vm1209_vm7, %v1248_v41, %v1250_v1  ;;  %v1213_v14 = vsel %vm1209_vm7, %v2795_v60, %v2804_v8 }
 0x215   : > { %v2833_v54 = vadd.f32 %v1258_v63, %v1224_v23  ;;  %v1226_v43 = vadd.f32 %v1213_v14, %v1178_v58 }
 0x217   : > { %v1303_v34 = vpop.permute.xlu0 %1302  ;;  %v2810_v46 = vpop.permute.xlu1 %1157 }
 0x218   : > { %v1326_v6 = vmul.f32 %v1303_v34, %v2808_v27 }
 0x21a   : > { %1340 = vrot.lane.b32.xlu0 %v1326_v6, %s1891_s10  ;;  %v1381_v53 = vmul.f32 %v1326_v6, %v2808_v27 }
 0x21b   : > { %v1307_v4 = vpop.permute.xlu0 %1306  ;;  %v1252_v30 = vpop.permute.xlu1 %1251 }
 0x21c   : > { %v1259_v42 = vsel %vm1209_vm7, %v1250_v1, %v1252_v30  ;;  %v1074_v1 = vadd.f32 %v1060_v13, %v2779_v9 }
 0x21d   : > { %v2849_v28 = vadd.f32 %v1259_v42, %v1225_v38 }
 0x21e   : > { %v1127_v16 = vadd.f32 %v1113_v15, %v1074_v1 }
 0x21f   : > { %v1208_v25 = vpop.permute.xlu0 %1207  ;;  %v1305_v36 = vpop.permute.xlu1 %1304 }
 0x220   : > { %v1314_v52 = vsel %vm1209_vm7, %v1303_v34, %v1305_v36  ;;  %v1315_v32 = vsel %vm1209_vm7, %v1305_v36, %v1307_v4  ;;  %v1165_v34 = vsel %vm1108_vm6, %v2799_v50, %v2810_v46  ;;  %v1214_v6 = vsel %vm1209_vm7, %v2804_v8, %v1208_v25 }
 0x221   : > { %v1327_v31 = vmul.f32 %v1314_v52, %v2831_v47  ;;  %v1328_v59 = vmul.f32 %v1315_v32, %v2833_v54  ;;  %v1179_v7 = vadd.f32 %v1165_v34, %v1127_v16 }
 0x223   : > { %v1309_v41 = vpop.permute.xlu0 %1308  ;;  %1342 = vrot.lane.b32.xlu1 %v1327_v31, %s1891_s10  ;;  %v1160_v3 = vpop.permute.xlu1 %1159  ;;  %1344 = vrot.lane.b32.xlu0 %v1328_v59, %s1891_s10  ;;  %v1382_v0 = vmul.f32 %v1327_v31, %v2831_v47  ;;  %v1383_v24 = vmul.f32 %v1328_v59, %v2833_v54  ;;  %v1227_v35 = vadd.f32 %v1214_v6, %v1179_v7 }
 0x224   : > { %v1316_v55 = vsel %vm1209_vm7, %v1307_v4, %v1309_v41  ;;  %v1166_v21 = vsel %vm1108_vm6, %v2810_v46, %v1160_v3 }
 0x225   : > { %v1329_v39 = vmul.f32 %v1316_v55, %v2849_v28  ;;  %v1180_v18 = vadd.f32 %v1166_v21, %v1128_v37 }
 0x227   : > { %1346 = vrot.lane.b32.xlu1 %v1329_v39, %s1891_s10  ;;  %v1254_v60 = vpop.permute.xlu1 %1253  ;;  %1395 = vrot.lane.b32.xlu0 %v1381_v53, %s1891_s10  ;;  %v1311_v33 = vpop.permute.xlu0 %1310  ;;  %v1384_v11 = vmul.f32 %v1329_v39, %v2849_v28  ;;  %v1228_v4 = vadd.f32 %v1208_v25, %v1180_v18 }
 0x228   : > { %v1260_v9 = vsel %vm1209_vm7, %v1252_v30, %v1254_v60  ;;  %v1317_v17 = vsel %vm1209_vm7, %v1309_v41, %v1311_v33 }
 0x229   : > { %v2878_v61 = vadd.f32 %v1260_v9, %v1226_v43 }
 0x22b   : > { %1397 = vrot.lane.b32.xlu1 %v1382_v0, %s1891_s10  ;;  %v1256_v50 = vpop.permute.xlu1 %1255  ;;  %1399 = vrot.lane.b32.xlu0 %v1383_v24, %s1891_s10  ;;  %v1330_v8 = vmul.f32 %v1317_v17, %v2878_v61 }
 0x22c   : > { %v1261_v22 = vsel %vm1209_vm7, %v1254_v60, %v1256_v50  ;;  %v2897_v29 = vadd.f32 %v1256_v50, %v1228_v4 }
 0x22d   : > { %v2890_v56 = vadd.f32 %v1261_v22, %v1227_v35  ;;  %v1385_v57 = vmul.f32 %v1330_v8, %v2878_v61 }
 0x22f   : > { %1348 = vrot.lane.b32.xlu1 %v1330_v8, %s1891_s10  ;;  %v1313_v46 = vpop.permute.xlu1 %1312  ;;  %1401 = vrot.lane.b32.xlu0 %v1384_v11, %s1891_s10  ;;  %v1467_v8 = vld [vmem:[%s2999_s4] sm:$0xf] }
 0x230   : > { %v1318_v10 = vsel %vm1209_vm7, %v1311_v33, %v1313_v46  ;;  %v1332_v51 = vmul.f32 %v1313_v46, %v2897_v29  ;;  %v1454_v46 = vld [vmem:[%s2998_s3] sm:$0xf] }
 0x231   : > { %v1331_v30 = vmul.f32 %v1318_v10, %v2890_v56 }
 0x232   : > { %v1387_v19 = vmul.f32 %v1332_v51, %v2897_v29 }
 0x233   : > { %1350 = vrot.lane.b32.xlu1 %v1331_v30, %s1891_s10  ;;  %1403 = vrot.lane.b32.xlu0 %v1385_v57, %s1891_s10  ;;  %v1386_v63 = vmul.f32 %v1331_v30, %v2890_v56 }
 0x237   : > { %1352 = vrot.lane.b32.xlu1 %v1332_v51, %s1891_s10  ;;  %1405 = vrot.lane.b32.xlu0 %v1386_v63, %s1891_s10 }
 0x23b   : > { %1407 = vrot.lane.b32.xlu1 %v1387_v19, %s1891_s10 }
 0x28c   : > { %v1341_v12 = vpop.permute.xlu0 %1340 }
 0x295   : > { %v1343_v23 = vpop.permute.xlu1 %1342  ;;  %v1345_v5 = vpop.permute.xlu0 %1344 }
 0x296   : > { %v1355_v40 = vsel %vm1354_vm8, %v1341_v12, %v1343_v23  ;;  %v1356_v42 = vsel %vm1354_vm8, %v1343_v23, %v1345_v5 }
 0x297   : > { %v1368_v32 = vsel %vm1367_vm9, %v1355_v40, 0.0  ;;  %v1369_v49 = vsel %vm1367_vm9, %v1356_v42, 0.0 }
 0x298   : > { %v1370_v41 = vadd.f32 %v1369_v49, %v1368_v32 }
 0x299   : > { %v1347_v2 = vpop.permute.xlu1 %1346  ;;  %v1396_v62 = vpop.permute.xlu0 %1395 }
 0x29a   : > { %v1357_v52 = vsel %vm1354_vm8, %v1345_v5, %v1347_v2 }
 0x29b   : > { %v1371_v13 = vsel %vm1367_vm9, %v1357_v52, 0.0 }
 0x29c   : > { %v1372_v39 = vadd.f32 %v1371_v13, %v1370_v41 }
 0x29d   : > { %v1398_v25 = vpop.permute.xlu1 %1397  ;;  %v1400_v36 = vpop.permute.xlu0 %1399 }
 0x29e   : > { %v1409_v59 = vsel %vm1354_vm8, %v1396_v62, %v1398_v25  ;;  %v1410_v45 = vsel %vm1354_vm8, %v1398_v25, %v1400_v36 }
 0x29f   : > { %v1421_v14 = vsel %vm1367_vm9, %v1409_v59, 0.0  ;;  %v1422_v55 = vsel %vm1367_vm9, %v1410_v45, 0.0 }
 0x2a0   : > { %v1423_v16 = vadd.f32 %v1422_v55, %v1421_v14 }
 0x2a1   : > { %v1349_v38 = vpop.permute.xlu1 %1348  ;;  %v1402_v31 = vpop.permute.xlu0 %1401 }
 0x2a2   : > { %v1358_v48 = vsel %vm1354_vm8, %v1347_v2, %v1349_v38  ;;  %v1411_v3 = vsel %vm1354_vm8, %v1400_v36, %v1402_v31 }
 0x2a3   : > { %v1373_v15 = vsel %vm1367_vm9, %v1358_v48, 0.0  ;;  %v1424_v43 = vsel %vm1367_vm9, %v1411_v3, 0.0 }
 0x2a4   : > { %v1374_v26 = vadd.f32 %v1373_v15, %v1372_v39  ;;  %v1425_v0 = vadd.f32 %v1424_v43, %v1423_v16 }
 0x2a5   : > { %v1351_v58 = vpop.permute.xlu1 %1350  ;;  %v1404_v53 = vpop.permute.xlu0 %1403 }
 0x2a6   : > { %v1359_v1 = vsel %vm1354_vm8, %v1349_v38, %v1351_v58  ;;  %v1412_v20 = vsel %vm1354_vm8, %v1402_v31, %v1404_v53 }
 0x2a7   : > { %v1375_v60 = vsel %vm1367_vm9, %v1359_v1, 0.0  ;;  %v1426_v34 = vsel %vm1367_vm9, %v1412_v20, 0.0 }
 0x2a8   : > { %v1376_v24 = vadd.f32 %v1375_v60, %v1374_v26  ;;  %v1427_v7 = vadd.f32 %v1426_v34, %v1425_v0 }
 0x2a9   : > { %v1353_v9 = vpop.permute.xlu1 %1352  ;;  %v1406_v44 = vpop.permute.xlu0 %1405 }
 0x2aa   : > { %v1360_v33 = vsel %vm1354_vm8, %v1351_v58, %v1353_v9  ;;  %v1413_v6 = vsel %vm1354_vm8, %v1404_v53, %v1406_v44 }
 0x2ab   : > { %v1377_v21 = vsel %vm1367_vm9, %v1360_v33, 0.0  ;;  %v1428_v37 = vsel %vm1367_vm9, %v1413_v6, 0.0 }
 0x2ac   : > { %v1378_v50 = vadd.f32 %v1377_v21, %v1376_v24  ;;  %v1429_v22 = vadd.f32 %v1428_v37, %v1427_v7 }
 0x2ad   : > { %v1408_v17 = vpop.permute.xlu1 %1407 }
 0x2ae   : > { %v1414_v35 = vsel %vm1354_vm8, %v1406_v44, %v1408_v17  ;;  %1379 = vadd.xlane.f32.xlu0 %v1378_v50 }
 0x2af   : > { %v1430_v11 = vsel %vm1367_vm9, %v1414_v35, 0.0 }
 0x2b0   : > { %v1431_v18 = vadd.f32 %v1430_v11, %v1429_v22 }
 0x2b2   : > { %1432 = vadd.xlane.f32.xlu1 %v1431_v18 }
 0x2c3   : > { %1470 = vperm.xlu1 %1734, %v1467_v8  }
 0x2c4   : > { %1457 = vperm.xlu0 %1732, %v1454_v46  }
 0x337   : > { %v1380_v10 = vpop.xlane.xlu0 %1379 }
 0x338   : > { %v1434_v57 = vmul.f32 0.001953125, %v1380_v10 }
 0x33a   : > { %v1436_v51 = vmul.f32 %v1434_v57, %v1434_v57  ;;  %v1440_v12 = vsub.f32 %v2808_v27, %v1434_v57  ;;  %v1441_v23 = vsub.f32 %v2831_v47, %v1434_v57  ;;  %v1442_v5 = vsub.f32 %v2833_v54, %v1434_v57 }
 0x33b   : > { %v1433_v4 = vpop.xlane.xlu1 %1432  ;;  %v1443_v2 = vsub.f32 %v2849_v28, %v1434_v57  ;;  %v1444_v25 = vsub.f32 %v2878_v61, %v1434_v57  ;;  %v1445_v36 = vsub.f32 %v2890_v56, %v1434_v57  ;;  %v1446_v14 = vsub.f32 %v2897_v29, %v1434_v57 }
 0x33c   : > { %v1435_v30 = vmul.f32 0.001953125, %v1433_v4 }
 0x33e   : > { %v1437_v63 = vsub.f32 %v1435_v30, %v1436_v51 }
 0x33f   : > { %v1458_v49 = vpop.permute.xlu0 %1457  ;;  %v1471_v38 = vpop.permute.xlu1 %1470 }
 0x340   : > { %v1438_v19 = vadd.f32 1e-05, %v1437_v63 }
 0x342   : > { %1735 = vrsqrt.f32 %v1438_v19 }
 0x34f   : > { %v1736_v62 = vpop.eup %1735 }
 0x350   : > { %v1447_v40 = vmul.f32 %v1736_v62, %v1440_v12  ;;  %v1448_v42 = vmul.f32 %v1736_v62, %v1441_v23  ;;  %v1449_v52 = vmul.f32 %v1736_v62, %v1442_v5  ;;  %v1450_v32 = vmul.f32 %v1736_v62, %v1443_v2 }
 0x351   : > { %v1451_v31 = vmul.f32 %v1736_v62, %v1444_v25  ;;  %v1452_v59 = vmul.f32 %v1736_v62, %v1445_v36  ;;  %v1453_v53 = vmul.f32 %v1736_v62, %v1446_v14 }
 0x352   : > { %v1460_v27 = vmul.f32 %v1458_v49, %v1447_v40  ;;  %v1461_v45 = vmul.f32 %v1458_v49, %v1448_v42  ;;  %v1462_v47 = vmul.f32 %v1458_v49, %v1449_v52  ;;  %v1463_v48 = vmul.f32 %v1458_v49, %v1450_v32 }
 0x353   : > { %v1464_v28 = vmul.f32 %v1458_v49, %v1451_v31  ;;  %v1465_v56 = vmul.f32 %v1458_v49, %v1452_v59  ;;  %v1466_v1 = vmul.f32 %v1458_v49, %v1453_v53 }
 0x354   : > { %v1473_v54 = vadd.f32 %v1471_v38, %v1460_v27  ;;  %v1474_v13 = vadd.f32 %v1471_v38, %v1461_v45  ;;  %v1475_v3 = vadd.f32 %v1471_v38, %v1462_v47  ;;  %v1476_v61 = vadd.f32 %v1471_v38, %v1463_v48 }
 0x355   : > { %v1477_v15 = vadd.f32 %v1471_v38, %v1464_v28  ;;  %v1478_v58 = vadd.f32 %v1471_v38, %v1465_v56  ;;  %v1479_v20 = vadd.f32 %v1471_v38, %v1466_v1 }
 0x356   : > { %v1487_v41 = vcombine.low %v1473_v54, %v1474_v13  ;;  %v1488_v55 = vcombine.low %v1475_v3, %v1476_v61 }
 0x357   : > { %v1489_v39 = vcombine.low %v1477_v15, %v1478_v58 }
 0x358   : > { %1490 = vrot.lane.b32.xlu1 %v1487_v41, %s1891_s10 }
 0x35c   : > { %1492 = vrot.lane.b32.xlu1 %v1488_v55, %s1891_s10 }
 0x360   : > { %1494 = vrot.lane.b32.xlu1 %v1489_v39, %s1891_s10 }
 0x364   : > { %1496 = vrot.lane.b32.xlu1 %v1479_v20, %s1891_s10  ;;  %s1799_s10 = scalar_lea.vmem %s1798_s15, 768 }
 0x365   : > { %p1801_p9 = scmp.lt.s32.totalorder %s1799_s10, %s1793_s8 }
 0x367   : > { %p1802_p1 = por %p1801_p9, %p1800_p8 }
 0x369   : > { %p1803_p3 = pnand %p1802_p1, %p1796_p7 }
 0x3ca   : > { %v1491_v43 = vpop.permute.xlu1 %1490 }
 0x3cb   : > { %v1498_v16 = vrot.slane %v1491_v43, 4 }
 0x3ce   : > { %v1493_v60 = vpop.permute.xlu1 %1492 }
 0x3cf   : > { %v1499_v26 = vrot.slane %v1493_v60, 4 }
 0x3d1   : > { %v1502_v29 = vsel %vm1367_vm9, %v1498_v16, %v1499_v26 }
 0x3d2   : > { %v1503_v34 = vsel %vm1354_vm8, %v1491_v43, %v1502_v29  ;;  %v1495_v9 = vpop.permute.xlu1 %1494 }
 0x3d3   : > { %1511 = vst [vmem:[%s277_s9] sm:$0xff] %v1503_v34  ;;  %v1500_v44 = vrot.slane %v1495_v9, 4 }
 0x3d5   : > { %v1504_v0 = vsel %vm1367_vm9, %v1499_v26, %v1500_v44 }
 0x3d6   : > { %v1505_v24 = vsel %vm1354_vm8, %v1493_v60, %v1504_v0  ;;  %v1497_v33 = vpop.permute.xlu1 %1496 }
 0x3d7   : > { %1512 = vst [vmem:[%s277_s9 + $0x8] sm:$0xff] %v1505_v24  ;;  %v1501_v6 = vrot.slane %v1497_v33, 4 }
 0x3d9   : > { %v1506_v21 = vsel %vm1367_vm9, %v1500_v44, %v1501_v6 }
 0x3da   : > { %v1507_v37 = vsel %vm1354_vm8, %v1495_v9, %v1506_v21 }
 0x3db   : > { %1513 = vst [vmem:[%s277_s9 + $0x10] sm:$0xff] %v1507_v37 }
 0x3dc   : > { %1806 = shalt.err (!%p1803_p3)
}
 0x3dd   : > { %s1807_s13 = scalar_lea.hbm %s2958_s6, 384  ;;  %s1811_s16 = scalar_lea.hbm %s3000_s5, 3072 }
 0x3de   : > { %p1808_p13 = scmp.ne.s32.totalorder %s2958_s6, %s1807_s13  ;;  %p1812_p10 = scmp.lt.s32.totalorder %s2958_s6, %s3000_s5 }
 0x3df   : > { %p1813_p11 = scmp.lt.s32.totalorder %s1811_s16, %s1807_s13 }
 0x3e0   : > { %p1809_p0 = pnand %p1808_p13, %p3046_p4 }
 0x3e1   : > { %p1814_p2 = por %p1813_p11, %p1812_p10 }
 0x3e2   : > { %p1810_p6 = pneg %p1809_p0 }
 0x3e4   : > { %p1815_p12 = pnand %p1814_p2, %p1810_p6 }
 0x3e6   : > { %1818 = shalt.err (!%p1815_p12)
}
 0x3e7   : > { %1642 = dma.vmem_to_hbm [thread:$0]  (%p3046_p4), %s1530_s25, 384, %s2958_s6, %s1515_s26  }
 0x3e8 PF: > { %p1656_p5 = scmp.ge.s32.totalorder %s1861_s21, 2  ;;  %s1541_s9 = sand.u32 1, %s1849_s18  }
 0x3e9   : > { %p3047_p7 = scmp.ne.s32.totalorder %s3017_s30, 0  ;;  %s1542_s11 = scalar_lea.sflag [#allocation4], %s1541_s9 }
 0x3eb   : > { %p1652_p8 = pnand %p1656_p5, %p3047_p7 }
 0x3ed   : > { %p1653_p9 = pneg %p1652_p8 }
 0x3ef   : > { %1844 = dma.done.wait (%p1653_p9), %s1542_s11, 384  }
 0x3f0   : > { %1846 = vsyncadd (%p1653_p9), %s1542_s11, 4294966912  ;;  %p21_p1 = scmp.ge.s32.totalorder %s1948_s24, 10   ;;  %s3048_s18 = smov %s1853_s19 }
 0x3f1   : > { %s3049_s19 = smov %s1857_s20  ;;  %s3050_s20 = smov %s1960_s27 }
 0x3f2   : > { %s3051_s21 = smov %s1948_s24  ;;  %23 = sbr.rel (!%p21_p1) target bundleno = 7 (0x7), region = 98 }
 0x3f7   :  { %1547 = vsyncpa [#allocation3], 1 }
 0x3f8   :  { %1549 = vsyncpa [#allocation3 + $0x1], 1 }
 0x3f9   :  { %1550 = vsyncpa [#allocation6], 1 }
 0x3fa   :  { %1552 = vsyncpa [#allocation6 + $0x1], 1 }
 0x3fb   :  { %1553 = vsyncpa [#allocation4], 1 }
 0x3fc   :  { %1555 = vsyncpa [#allocation4 + $0x1], 1 }

</bundles_post_ra>
